<compile_context>
chip_gen: v5e
topology: v5e:2x2
jax: 0.10.0
libtpu: 0.0.40
codegen_flags: <defaults>
</compile_context>

<pallas_src>
import jax
import jax.numpy as jnp
from jax.experimental import pallas as pl
from jax.experimental.pallas import tpu as pltpu


B_BLK = 8  # sublane width; batch block processed per grid step


# ----------------------------- fused Pallas kernel --------------------------

def make_fused_kernel(Ks, num_layers, S):
    """Build the fused CNN+LSTM+head kernel for static kernel sizes / layer count."""
    max_K = max(Ks)

    def kernel(*refs):
        emb_ref, wconv_ref, bconv_ref, mask_ref = refs[0:4]
        idx = 4
        lstm_refs = []
        for _ in range(num_layers):
            lstm_refs.append((refs[idx], refs[idx + 1], refs[idx + 2]))
            idx += 3
        fc1w_ref, fc1b_ref, fc2w_ref, fc2b_ref = refs[idx:idx + 4]
        out_ref = refs[idx + 4]
        h_scratch = refs[idx + 5]

        S_pad, B, D = emb_ref.shape          # B == B_BLK (one batch block)
        nCo = wconv_ref.shape[1]
        T = S_pad - max_K + 1                # fused conv output length

        # (s, b) -> row s*B + b; aligned since B is a multiple of 8.
        emb_flat = emb_ref[...].reshape(S_pad * B, D)

        # ---- CNN branch: fused shifted matmuls (wide N = n_conv*Co) ----
        acc = jnp.dot(emb_flat[0:T * B, :], wconv_ref[0:D, :],
                      preferred_element_type=jnp.float32)
        for k in range(1, max_K):
            acc = acc + jnp.dot(emb_flat[k * B:(k + T) * B, :],
                                wconv_ref[k * D:(k + 1) * D, :],
                                preferred_element_type=jnp.float32)
        # mask timesteps whose window runs past the real sequence, then time max-pool
        acc3 = acc.reshape(T, B, nCo) + mask_ref[...]
        m = jnp.max(acc3, axis=0)                                  # (B, nCo)
        # bias add + ReLU commute with the time max -> epilogue on the pooled tile only
        cnn_x = jnp.maximum(m + bconv_ref[...], 0.0)               # (B, n_conv*Co)
        # TODO(synk): nn.Dropout on cnn_x treated as identity (eval/inference mode).

        # ---- LSTM branch: x@W_ih hoisted out of the (fully unrolled) recurrence ----
        layer_in = emb_flat[0:S * B, :]       # rows [t*B:(t+1)*B] == timestep t
        h_max = None
        for li, (wih_ref, whh_ref, b_ref) in enumerate(lstm_refs):
            is_last = li == num_layers - 1
            H = whh_ref.shape[0]
            whh = whh_ref[...]
            # one MXU-efficient matmul for the whole sequence (input->hidden + bias)
            gx = jnp.dot(layer_in, wih_ref[...],
                         preferred_element_type=jnp.float32) + b_ref[...]   # (S*B, 4H)

            # t = 0 peeled: h == c == 0, so the h@W_hh matmul is skipped and
            # h_max is initialized from the first h.
            g = gx[0:B, :]
            sig = jax.nn.sigmoid(g)           # one merged activation over all 4 gates
            c = sig[:, 0:H] * jnp.tanh(g[:, 2 * H:3 * H])          # f*c_prev == 0
            h = sig[:, 3 * H:4 * H] * jnp.tanh(c)
            if is_last:
                h_max = h
            else:
                h_scratch[0:B, :] = h

            for t in range(1, S):             # static unroll, S is small
                g = gx[t * B:(t + 1) * B, :] + jnp.dot(
                    h, whh, preferred_element_type=jnp.float32)
                sig = jax.nn.sigmoid(g)       # gates i,f,_,o in one EUP pass
                c = sig[:, H:2 * H] * c + sig[:, 0:H] * jnp.tanh(g[:, 2 * H:3 * H])
                h = sig[:, 3 * H:4 * H] * jnp.tanh(c)
                if is_last:
                    h_max = jnp.maximum(h_max, h)     # fused max-pool over time
                else:
                    h_scratch[t * B:(t + 1) * B, :] = h   # vst slot, off critical path

            if not is_last:
                layer_in = h_scratch[...]             # feed next layer's gx matmul
            # TODO(synk): inter-layer LSTM dropout treated as identity (eval mode).

        # ---- head: fc2(tanh(fc1(tanh(concat(cnn_x, lstm_maxpool))))) ----
        feat = jnp.concatenate([cnn_x, h_max], axis=1)             # (B, L)
        h1 = jnp.dot(jnp.tanh(feat), fc1w_ref[...],
                     preferred_element_type=jnp.float32) + fc1b_ref[...]
        logits = jnp.dot(jnp.tanh(h1), fc2w_ref[...],
                         preferred_element_type=jnp.float32) + fc2b_ref[...]
        out_ref[...] = logits.astype(out_ref.dtype)

    return kernel


# ----------------------------- wrapper ---------------------------------------

def cnn_lstm_forward(params, x_tokens, Ks):
    # x_tokens: (S, B) int32 token ids
    S, B = x_tokens.shape
    D = params["embed"].shape[1]
    Co = params["convs"][0][0].shape[1]
    H = params["lstm"][0][1].shape[0]
    C = params["fc2_w"].shape[1]
    n_conv = len(Ks)
    max_K, min_K = max(Ks), min(Ks)

    # Pad batch to a multiple of 8 (sublane width) and time by max_K - min_K zero
    # rows so one fused conv accumulator covers every conv's full valid range.
    B_pad = ((B + B_BLK - 1) // B_BLK) * B_BLK
    S_pad = S + (max_K - min_K)
    T_fused = S_pad - max_K + 1            # == S - min_K + 1

    # Embedding gather stays in plain JAX glue; pad with zeros (padding rows inert).
    emb = params["embed"][x_tokens]                                 # (S, B, D)
    emb_pad = jnp.zeros((S_pad, B_pad, D), jnp.float32).at[:S, :B, :].set(emb)

    # Fuse conv weights/biases: (max_K*D, n_conv*Co), zero where shift k >= K_c.
    wconv = jnp.zeros((max_K * D, n_conv * Co), jnp.float32)
    bconv = jnp.zeros((1, n_conv * Co), jnp.float32)
    for c_i, ((w, b), K) in enumerate(zip(params["convs"], Ks)):
        for k in range(K):
            wconv = wconv.at[k * D:(k + 1) * D, c_i * Co:(c_i + 1) * Co].set(
                w[k * D:(k + 1) * D, :])
        bconv = bconv.at[:, c_i * Co:(c_i + 1) * Co].set(b)

    # Per-conv time-validity mask: 0 where the window fits the real sequence, else -1e30.
    mask_cols = []
    for K in Ks:
        T_c = S - K + 1
        col = jnp.where(jnp.arange(T_fused) < T_c, 0.0, -1e30).astype(jnp.float32)
        mask_cols.append(jnp.broadcast_to(col[:, None, None], (T_fused, B_BLK, Co)))
    mask = jnp.concatenate(mask_cols, axis=2)        # (T_fused, B_BLK, n_conv*Co)

    inputs = [emb_pad, wconv, bconv, mask]
    for (w_ih, w_hh, b) in params["lstm"]:
        inputs += [w_ih, w_hh, b]
    inputs += [params["fc1_w"], params["fc1_b"], params["fc2_w"], params["fc2_b"]]

    in_specs = [pl.BlockSpec((S_pad, B_BLK, D), lambda i: (0, i, 0))]
    in_specs += [pl.BlockSpec(a.shape, (lambda i, _nd=a.ndim: (0,) * _nd))
                 for a in inputs[1:]]

    kernel = make_fused_kernel(tuple(Ks), len(params["lstm"]), S)

    out = pl.pallas_call(
        kernel,
        out_shape=jax.ShapeDtypeStruct((B_pad, C), jnp.float32),
        grid=(B_pad // B_BLK,),
        in_specs=in_specs,
        out_specs=pl.BlockSpec((B_BLK, C), lambda i: (i, 0)),
        scratch_shapes=[pltpu.VMEM((S * B_BLK, H), jnp.float32)],
        compiler_params=pltpu.CompilerParams(dimension_semantics=("parallel",)),
    )(*inputs)
    return out[:B]


# ----------------------------- params ----------------------------------------

def init_params(key, V, D, C, Co, Ks, H, num_layers, padding_id):
    keys = jax.random.split(key, 16)
    params = {}
    embed = 0.1 * jax.random.normal(keys[0], (V, D), jnp.float32)
    embed = embed.at[padding_id].set(0.0)          # nn.Embedding padding_idx row = 0
    params["embed"] = embed

    convs = []
    for i, K in enumerate(Ks):
        kw, kb = jax.random.split(keys[1 + i])
        s = 1.0 / jnp.sqrt(float(K * D))
        w = jax.random.uniform(kw, (K * D, Co), jnp.float32, -s, s)
        b = jax.random.uniform(kb, (1, Co), jnp.float32, -s, s)
        convs.append((w, b))
    params["convs"] = convs

    lstm = []
    for l in range(num_layers):
        din = D if l == 0 else H
        k1, k2, k3 = jax.random.split(keys[8 + l], 3)
        s = 1.0 / jnp.sqrt(float(H))
        w_ih = jax.random.uniform(k1, (din, 4 * H), jnp.float32, -s, s)
        w_hh = jax.random.uniform(k2, (H, 4 * H), jnp.float32, -s, s)
        b = jax.random.uniform(k3, (1, 4 * H), jnp.float32, -s, s)  # b_ih + b_hh fused
        lstm.append((w_ih, w_hh, b))
    params["lstm"] = lstm

    L = len(Ks) * Co + H
    L2 = L // 2
    s1 = 1.0 / jnp.sqrt(float(L))
    s2 = 1.0 / jnp.sqrt(float(L2))
    params["fc1_w"] = jax.random.uniform(keys[12], (L, L2), jnp.float32, -s1, s1)
    params["fc1_b"] = jax.random.uniform(keys[13], (1, L2), jnp.float32, -s1, s1)
    params["fc2_w"] = jax.random.uniform(keys[14], (L2, C), jnp.float32, -s2, s2)
    params["fc2_b"] = jax.random.uniform(keys[15], (1, C), jnp.float32, -s2, s2)
    return params


# ----------------------------- pure-JAX reference -----------------------------

def reference_forward(params, x_tokens, Ks):
    hp = jax.lax.Precision.HIGHEST
    emb = params["embed"][x_tokens]
    emb_bt = jnp.transpose(emb, (1, 0, 2))
    B, S, D = emb_bt.shape
    feats = []
    for (w, b), K in zip(params["convs"], Ks):
        T = S - K + 1
        wins = jnp.stack(
            [emb_bt[:, t:t + K, :].reshape(B, K * D) for t in range(T)], axis=1)
        s = jnp.maximum(jnp.einsum("btk,kc->btc", wins, w, precision=hp) + b, 0.0)
        feats.append(jnp.max(s, axis=1))
    cnn_x = jnp.concatenate(feats, axis=1)

    h_in = emb
    for (w_ih, w_hh, b) in params["lstm"]:
        H = w_hh.shape[0]

        def step(carry, x_t, w_ih=w_ih, w_hh=w_hh, b=b, H=H):
            h, c = carry
            g = (jnp.dot(x_t, w_ih, precision=hp)
                 + jnp.dot(h, w_hh, precision=hp) + b)
            i = jax.nn.sigmoid(g[:, :H])
            f = jax.nn.sigmoid(g[:, H:2 * H])
            gg = jnp.tanh(g[:, 2 * H:3 * H])
            o = jax.nn.sigmoid(g[:, 3 * H:])
            c = f * c + i * gg
            h = o * jnp.tanh(c)
            return (h, c), h

        init = (jnp.zeros((B, H), jnp.float32), jnp.zeros((B, H), jnp.float32))
        _, hs = jax.lax.scan(step, init, h_in)
        h_in = hs
    h_max = jnp.max(h_in, axis=0)

    feat = jnp.concatenate([cnn_x, h_max], axis=1)
    h1 = jnp.dot(jnp.tanh(feat), params["fc1_w"], precision=hp) + params["fc1_b"]
    return jnp.dot(jnp.tanh(h1), params["fc2_w"], precision=hp) + params["fc2_b"]


# ----------------------------- main -------------------------------------------

if __name__ == "__main__":
    # Small config implied by the module's __init__.
    V, D, C = 50, 16, 3          # embed_num, embed_dim, class_num
    Co, Ks = 4, (2, 3, 4)        # kernel_num, kernel_sizes
    H, num_layers = 8, 2         # lstm_hidden_dim, lstm_num_layers
    S, B = 8, 2                  # seq_len, batch
    padding_id = 0

    key = jax.random.PRNGKey(0)
    k_tok, k_par = jax.random.split(key)
    params = init_params(k_par, V, D, C, Co, Ks, H, num_layers, padding_id)
    x_tokens = jax.random.randint(k_tok, (S, B), 0, V, dtype=jnp.int32)

    logits = cnn_lstm_forward(params, x_tokens, Ks)
    logits = jax.block_until_ready(logits)

    ref = reference_forward(params, x_tokens, Ks)
    assert logits.shape == (B, C)
    assert jnp.allclose(logits, ref, atol=2e-4, rtol=2e-4), (logits, ref)

    print("KERNEL_OK")
</pallas_src>

<mosaic_0001>
module attributes {stable_mosaic.version = 11 : i64} {
  func.func @kernel(%arg0: i32, %arg1: memref<10x8x16xf32, #tpu.memory_space<vmem>>, %arg2: memref<64x12xf32, #tpu.memory_space<vmem>>, %arg3: memref<1x12xf32, #tpu.memory_space<vmem>>, %arg4: memref<7x8x12xf32, #tpu.memory_space<vmem>>, %arg5: memref<16x32xf32, #tpu.memory_space<vmem>>, %arg6: memref<8x32xf32, #tpu.memory_space<vmem>>, %arg7: memref<1x32xf32, #tpu.memory_space<vmem>>, %arg8: memref<8x32xf32, #tpu.memory_space<vmem>>, %arg9: memref<8x32xf32, #tpu.memory_space<vmem>>, %arg10: memref<1x32xf32, #tpu.memory_space<vmem>>, %arg11: memref<20x10xf32, #tpu.memory_space<vmem>>, %arg12: memref<1x10xf32, #tpu.memory_space<vmem>>, %arg13: memref<10x3xf32, #tpu.memory_space<vmem>>, %arg14: memref<1x3xf32, #tpu.memory_space<vmem>>, %arg15: memref<8x3xf32, #tpu.memory_space<vmem>>, %arg16: memref<64x8xf32, #tpu.memory_space<vmem>>) attributes {dimension_semantics = [#tpu.dimension_semantics<parallel>], iteration_bounds = array<i64: 1>, scalar_prefetch = 0 : i64, scratch_operands = 1 : i64, tpu.core_type = #tpu.core_type<tc>, window_params = [{transform_indices = @transform_0, window_bounds = array<i64: 10, 8, 16>}, {pipeline_mode = #tpu.pipeline_mode<synchronous>, transform_indices = @transform_1, window_bounds = array<i64: 64, 12>}, {pipeline_mode = #tpu.pipeline_mode<synchronous>, transform_indices = @transform_2, window_bounds = array<i64: 1, 12>}, {pipeline_mode = #tpu.pipeline_mode<synchronous>, transform_indices = @transform_3, window_bounds = array<i64: 7, 8, 12>}, {pipeline_mode = #tpu.pipeline_mode<synchronous>, transform_indices = @transform_4, window_bounds = array<i64: 16, 32>}, {pipeline_mode = #tpu.pipeline_mode<synchronous>, transform_indices = @transform_5, window_bounds = array<i64: 8, 32>}, {pipeline_mode = #tpu.pipeline_mode<synchronous>, transform_indices = @transform_6, window_bounds = array<i64: 1, 32>}, {pipeline_mode = #tpu.pipeline_mode<synchronous>, transform_indices = @transform_7, window_bounds = array<i64: 8, 32>}, {pipeline_mode = #tpu.pipeline_mode<synchronous>, transform_indices = @transform_8, window_bounds = array<i64: 8, 32>}, {pipeline_mode = #tpu.pipeline_mode<synchronous>, transform_indices = @transform_9, window_bounds = array<i64: 1, 32>}, {pipeline_mode = #tpu.pipeline_mode<synchronous>, transform_indices = @transform_10, window_bounds = array<i64: 20, 10>}, {pipeline_mode = #tpu.pipeline_mode<synchronous>, transform_indices = @transform_11, window_bounds = array<i64: 1, 10>}, {pipeline_mode = #tpu.pipeline_mode<synchronous>, transform_indices = @transform_12, window_bounds = array<i64: 10, 3>}, {pipeline_mode = #tpu.pipeline_mode<synchronous>, transform_indices = @transform_13, window_bounds = array<i64: 1, 3>}, {transform_indices = @transform_14, window_bounds = array<i64: 8, 3>}]} {
    %c0 = arith.constant 0 : index
    %c0_0 = arith.constant 0 : index
    %c0_1 = arith.constant 0 : index
    %0 = vector.load %arg1[%c0, %c0_0, %c0_1] : memref<10x8x16xf32, #tpu.memory_space<vmem>>, vector<10x8x16xf32>
    %1 = vector.shape_cast %0 : vector<10x8x16xf32> to vector<80x16xf32>
    %2 = vector.extract_strided_slice %1 {offsets = [0, 0], sizes = [56, 16], strides = [1, 1]} : vector<80x16xf32> to vector<56x16xf32>
    %c0_2 = arith.constant 0 : index
    %c0_3 = arith.constant 0 : index
    %3 = vector.load %arg2[%c0_2, %c0_3] : memref<64x12xf32, #tpu.memory_space<vmem>>, vector<16x12xf32>
    %cst = arith.constant dense<0.000000e+00> : vector<56x12xf32>
    %4 = tpu.matmul %2, %3, %cst {dimension_numbers = #tpu.dot_dimension_numbers<[1], [0], [0], [1], [0, 0, 1, 1], [], []>} : vector<56x16xf32>, vector<16x12xf32>, vector<56x12xf32> -> vector<56x12xf32>
    %5 = vector.extract_strided_slice %1 {offsets = [8, 0], sizes = [56, 16], strides = [1, 1]} : vector<80x16xf32> to vector<56x16xf32>
    %c16 = arith.constant 16 : index
    %c0_4 = arith.constant 0 : index
    %6 = vector.load %arg2[%c16, %c0_4] : memref<64x12xf32, #tpu.memory_space<vmem>>, vector<16x12xf32>
    %cst_5 = arith.constant dense<0.000000e+00> : vector<56x12xf32>
    %7 = tpu.matmul %5, %6, %cst_5 {dimension_numbers = #tpu.dot_dimension_numbers<[1], [0], [0], [1], [0, 0, 1, 1], [], []>} : vector<56x16xf32>, vector<16x12xf32>, vector<56x12xf32> -> vector<56x12xf32>
    %8 = arith.addf %4, %7 : vector<56x12xf32>
    %9 = vector.extract_strided_slice %1 {offsets = [16, 0], sizes = [56, 16], strides = [1, 1]} : vector<80x16xf32> to vector<56x16xf32>
    %c32 = arith.constant 32 : index
    %c0_6 = arith.constant 0 : index
    %10 = vector.load %arg2[%c32, %c0_6] : memref<64x12xf32, #tpu.memory_space<vmem>>, vector<16x12xf32>
    %cst_7 = arith.constant dense<0.000000e+00> : vector<56x12xf32>
    %11 = tpu.matmul %9, %10, %cst_7 {dimension_numbers = #tpu.dot_dimension_numbers<[1], [0], [0], [1], [0, 0, 1, 1], [], []>} : vector<56x16xf32>, vector<16x12xf32>, vector<56x12xf32> -> vector<56x12xf32>
    %12 = arith.addf %8, %11 : vector<56x12xf32>
    %13 = vector.extract_strided_slice %1 {offsets = [24, 0], sizes = [56, 16], strides = [1, 1]} : vector<80x16xf32> to vector<56x16xf32>
    %c48 = arith.constant 48 : index
    %c0_8 = arith.constant 0 : index
    %14 = vector.load %arg2[%c48, %c0_8] : memref<64x12xf32, #tpu.memory_space<vmem>>, vector<16x12xf32>
    %cst_9 = arith.constant dense<0.000000e+00> : vector<56x12xf32>
    %15 = tpu.matmul %13, %14, %cst_9 {dimension_numbers = #tpu.dot_dimension_numbers<[1], [0], [0], [1], [0, 0, 1, 1], [], []>} : vector<56x16xf32>, vector<16x12xf32>, vector<56x12xf32> -> vector<56x12xf32>
    %16 = arith.addf %12, %15 : vector<56x12xf32>
    %17 = vector.shape_cast %16 : vector<56x12xf32> to vector<7x8x12xf32>
    %c0_10 = arith.constant 0 : index
    %c0_11 = arith.constant 0 : index
    %c0_12 = arith.constant 0 : index
    %18 = vector.load %arg4[%c0_10, %c0_11, %c0_12] : memref<7x8x12xf32, #tpu.memory_space<vmem>>, vector<7x8x12xf32>
    %19 = arith.addf %17, %18 : vector<7x8x12xf32>
    %cst_13 = arith.constant dense<0xFF800000> : vector<8x12xf32>
    %20 = vector.multi_reduction <maximumf>, %19, %cst_13 [0] : vector<7x8x12xf32> to vector<8x12xf32>
    %c0_14 = arith.constant 0 : index
    %c0_15 = arith.constant 0 : index
    %21 = vector.load %arg3[%c0_14, %c0_15] : memref<1x12xf32, #tpu.memory_space<vmem>>, vector<1x12xf32>
    %22 = vector.broadcast %21 : vector<1x12xf32> to vector<8x12xf32>
    %23 = arith.addf %20, %22 : vector<8x12xf32>
    %cst_16 = arith.constant 0.000000e+00 : f32
    %24 = vector.broadcast %cst_16 : f32 to vector<8x12xf32>
    %25 = arith.maximumf %23, %24 : vector<8x12xf32>
    %26 = vector.extract_strided_slice %1 {offsets = [0, 0], sizes = [64, 16], strides = [1, 1]} : vector<80x16xf32> to vector<64x16xf32>
    %c0_17 = arith.constant 0 : index
    %c0_18 = arith.constant 0 : index
    %27 = vector.load %arg6[%c0_17, %c0_18] : memref<8x32xf32, #tpu.memory_space<vmem>>, vector<8x32xf32>
    %c0_19 = arith.constant 0 : index
    %c0_20 = arith.constant 0 : index
    %28 = vector.load %arg5[%c0_19, %c0_20] : memref<16x32xf32, #tpu.memory_space<vmem>>, vector<16x32xf32>
    %cst_21 = arith.constant dense<0.000000e+00> : vector<64x32xf32>
    %29 = tpu.matmul %26, %28, %cst_21 {dimension_numbers = #tpu.dot_dimension_numbers<[1], [0], [0], [1], [0, 0, 1, 1], [], []>} : vector<64x16xf32>, vector<16x32xf32>, vector<64x32xf32> -> vector<64x32xf32>
    %c0_22 = arith.constant 0 : index
    %c0_23 = arith.constant 0 : index
    %30 = vector.load %arg7[%c0_22, %c0_23] : memref<1x32xf32, #tpu.memory_space<vmem>>, vector<1x32xf32>
    %31 = vector.broadcast %30 : vector<1x32xf32> to vector<64x32xf32>
    %32 = arith.addf %29, %31 : vector<64x32xf32>
    %33 = vector.extract_strided_slice %32 {offsets = [0, 0], sizes = [8, 32], strides = [1, 1]} : vector<64x32xf32> to vector<8x32xf32>
    %34 = arith.negf %33 : vector<8x32xf32>
    %35 = math.exp %34 : vector<8x32xf32>
    %cst_24 = arith.constant 1.000000e+00 : f32
    %36 = vector.broadcast %cst_24 : f32 to vector<8x32xf32>
    %37 = arith.addf %36, %35 : vector<8x32xf32>
    %38 = arith.divf %36, %37 : vector<8x32xf32>
    %39 = vector.extract_strided_slice %38 {offsets = [0, 0], sizes = [8, 8], strides = [1, 1]} : vector<8x32xf32> to vector<8x8xf32>
    %40 = vector.extract_strided_slice %33 {offsets = [0, 16], sizes = [8, 8], strides = [1, 1]} : vector<8x32xf32> to vector<8x8xf32>
    %41 = math.tanh %40 : vector<8x8xf32>
    %42 = arith.mulf %39, %41 : vector<8x8xf32>
    %43 = vector.extract_strided_slice %38 {offsets = [0, 24], sizes = [8, 8], strides = [1, 1]} : vector<8x32xf32> to vector<8x8xf32>
    %44 = math.tanh %42 : vector<8x8xf32>
    %45 = arith.mulf %43, %44 : vector<8x8xf32>
    %c0_25 = arith.constant 0 : index
    %c0_26 = arith.constant 0 : index
    %46 = vector.load %arg16[%c0_25, %c0_26] : memref<64x8xf32, #tpu.memory_space<vmem>>, vector<8x8xf32>
    tpu.vector_store %arg16[%c0_25, %c0_26], %45 {strides = array<i32>} : memref<64x8xf32, #tpu.memory_space<vmem>>, vector<8x8xf32>,
    %47 = vector.extract_strided_slice %32 {offsets = [8, 0], sizes = [8, 32], strides = [1, 1]} : vector<64x32xf32> to vector<8x32xf32>
    %cst_27 = arith.constant dense<0.000000e+00> : vector<8x32xf32>
    %48 = tpu.matmul %45, %27, %cst_27 {dimension_numbers = #tpu.dot_dimension_numbers<[1], [0], [0], [1], [0, 0, 1, 1], [], []>} : vector<8x8xf32>, vector<8x32xf32>, vector<8x32xf32> -> vector<8x32xf32>
    %49 = arith.addf %47, %48 : vector<8x32xf32>
    %50 = arith.negf %49 : vector<8x32xf32>
    %51 = math.exp %50 : vector<8x32xf32>
    %cst_28 = arith.constant 1.000000e+00 : f32
    %52 = vector.broadcast %cst_28 : f32 to vector<8x32xf32>
    %53 = arith.addf %52, %51 : vector<8x32xf32>
    %54 = arith.divf %52, %53 : vector<8x32xf32>
    %55 = vector.extract_strided_slice %54 {offsets = [0, 8], sizes = [8, 8], strides = [1, 1]} : vector<8x32xf32> to vector<8x8xf32>
    %56 = arith.mulf %55, %42 : vector<8x8xf32>
    %57 = vector.extract_strided_slice %54 {offsets = [0, 0], sizes = [8, 8], strides = [1, 1]} : vector<8x32xf32> to vector<8x8xf32>
    %58 = vector.extract_strided_slice %49 {offsets = [0, 16], sizes = [8, 8], strides = [1, 1]} : vector<8x32xf32> to vector<8x8xf32>
    %59 = math.tanh %58 : vector<8x8xf32>
    %60 = arith.mulf %57, %59 : vector<8x8xf32>
    %61 = arith.addf %56, %60 : vector<8x8xf32>
    %62 = vector.extract_strided_slice %54 {offsets = [0, 24], sizes = [8, 8], strides = [1, 1]} : vector<8x32xf32> to vector<8x8xf32>
    %63 = math.tanh %61 : vector<8x8xf32>
    %64 = arith.mulf %62, %63 : vector<8x8xf32>
    %c8 = arith.constant 8 : index
    %c0_29 = arith.constant 0 : index
    %65 = vector.load %arg16[%c8, %c0_29] : memref<64x8xf32, #tpu.memory_space<vmem>>, vector<8x8xf32>
    tpu.vector_store %arg16[%c8, %c0_29], %64 {strides = array<i32>} : memref<64x8xf32, #tpu.memory_space<vmem>>, vector<8x8xf32>,
    %66 = vector.extract_strided_slice %32 {offsets = [16, 0], sizes = [8, 32], strides = [1, 1]} : vector<64x32xf32> to vector<8x32xf32>
    %cst_30 = arith.constant dense<0.000000e+00> : vector<8x32xf32>
    %67 = tpu.matmul %64, %27, %cst_30 {dimension_numbers = #tpu.dot_dimension_numbers<[1], [0], [0], [1], [0, 0, 1, 1], [], []>} : vector<8x8xf32>, vector<8x32xf32>, vector<8x32xf32> -> vector<8x32xf32>
    %68 = arith.addf %66, %67 : vector<8x32xf32>
    %69 = arith.negf %68 : vector<8x32xf32>
    %70 = math.exp %69 : vector<8x32xf32>
    %cst_31 = arith.constant 1.000000e+00 : f32
    %71 = vector.broadcast %cst_31 : f32 to vector<8x32xf32>
    %72 = arith.addf %71, %70 : vector<8x32xf32>
    %73 = arith.divf %71, %72 : vector<8x32xf32>
    %74 = vector.extract_strided_slice %73 {offsets = [0, 8], sizes = [8, 8], strides = [1, 1]} : vector<8x32xf32> to vector<8x8xf32>
    %75 = arith.mulf %74, %61 : vector<8x8xf32>
    %76 = vector.extract_strided_slice %73 {offsets = [0, 0], sizes = [8, 8], strides = [1, 1]} : vector<8x32xf32> to vector<8x8xf32>
    %77 = vector.extract_strided_slice %68 {offsets = [0, 16], sizes = [8, 8], strides = [1, 1]} : vector<8x32xf32> to vector<8x8xf32>
    %78 = math.tanh %77 : vector<8x8xf32>
    %79 = arith.mulf %76, %78 : vector<8x8xf32>
    %80 = arith.addf %75, %79 : vector<8x8xf32>
    %81 = vector.extract_strided_slice %73 {offsets = [0, 24], sizes = [8, 8], strides = [1, 1]} : vector<8x32xf32> to vector<8x8xf32>
    %82 = math.tanh %80 : vector<8x8xf32>
    %83 = arith.mulf %81, %82 : vector<8x8xf32>
    %c16_32 = arith.constant 16 : index
    %c0_33 = arith.constant 0 : index
    %84 = vector.load %arg16[%c16_32, %c0_33] : memref<64x8xf32, #tpu.memory_space<vmem>>, vector<8x8xf32>
    tpu.vector_store %arg16[%c16_32, %c0_33], %83 {strides = array<i32>} : memref<64x8xf32, #tpu.memory_space<vmem>>, vector<8x8xf32>,
    %85 = vector.extract_strided_slice %32 {offsets = [24, 0], sizes = [8, 32], strides = [1, 1]} : vector<64x32xf32> to vector<8x32xf32>
    %cst_34 = arith.constant dense<0.000000e+00> : vector<8x32xf32>
    %86 = tpu.matmul %83, %27, %cst_34 {dimension_numbers = #tpu.dot_dimension_numbers<[1], [0], [0], [1], [0, 0, 1, 1], [], []>} : vector<8x8xf32>, vector<8x32xf32>, vector<8x32xf32> -> vector<8x32xf32>
    %87 = arith.addf %85, %86 : vector<8x32xf32>
    %88 = arith.negf %87 : vector<8x32xf32>
    %89 = math.exp %88 : vector<8x32xf32>
    %cst_35 = arith.constant 1.000000e+00 : f32
    %90 = vector.broadcast %cst_35 : f32 to vector<8x32xf32>
    %91 = arith.addf %90, %89 : vector<8x32xf32>
    %92 = arith.divf %90, %91 : vector<8x32xf32>
    %93 = vector.extract_strided_slice %92 {offsets = [0, 8], sizes = [8, 8], strides = [1, 1]} : vector<8x32xf32> to vector<8x8xf32>
    %94 = arith.mulf %93, %80 : vector<8x8xf32>
    %95 = vector.extract_strided_slice %92 {offsets = [0, 0], sizes = [8, 8], strides = [1, 1]} : vector<8x32xf32> to vector<8x8xf32>
    %96 = vector.extract_strided_slice %87 {offsets = [0, 16], sizes = [8, 8], strides = [1, 1]} : vector<8x32xf32> to vector<8x8xf32>
    %97 = math.tanh %96 : vector<8x8xf32>
    %98 = arith.mulf %95, %97 : vector<8x8xf32>
    %99 = arith.addf %94, %98 : vector<8x8xf32>
    %100 = vector.extract_strided_slice %92 {offsets = [0, 24], sizes = [8, 8], strides = [1, 1]} : vector<8x32xf32> to vector<8x8xf32>
    %101 = math.tanh %99 : vector<8x8xf32>
    %102 = arith.mulf %100, %101 : vector<8x8xf32>
    %c24 = arith.constant 24 : index
    %c0_36 = arith.constant 0 : index
    %103 = vector.load %arg16[%c24, %c0_36] : memref<64x8xf32, #tpu.memory_space<vmem>>, vector<8x8xf32>
    tpu.vector_store %arg16[%c24, %c0_36], %102 {strides = array<i32>} : memref<64x8xf32, #tpu.memory_space<vmem>>, vector<8x8xf32>,
    %104 = vector.extract_strided_slice %32 {offsets = [32, 0], sizes = [8, 32], strides = [1, 1]} : vector<64x32xf32> to vector<8x32xf32>
    %cst_37 = arith.constant dense<0.000000e+00> : vector<8x32xf32>
    %105 = tpu.matmul %102, %27, %cst_37 {dimension_numbers = #tpu.dot_dimension_numbers<[1], [0], [0], [1], [0, 0, 1, 1], [], []>} : vector<8x8xf32>, vector<8x32xf32>, vector<8x32xf32> -> vector<8x32xf32>
    %106 = arith.addf %104, %105 : vector<8x32xf32>
    %107 = arith.negf %106 : vector<8x32xf32>
    %108 = math.exp %107 : vector<8x32xf32>
    %cst_38 = arith.constant 1.000000e+00 : f32
    %109 = vector.broadcast %cst_38 : f32 to vector<8x32xf32>
    %110 = arith.addf %109, %108 : vector<8x32xf32>
    %111 = arith.divf %109, %110 : vector<8x32xf32>
    %112 = vector.extract_strided_slice %111 {offsets = [0, 8], sizes = [8, 8], strides = [1, 1]} : vector<8x32xf32> to vector<8x8xf32>
    %113 = arith.mulf %112, %99 : vector<8x8xf32>
    %114 = vector.extract_strided_slice %111 {offsets = [0, 0], sizes = [8, 8], strides = [1, 1]} : vector<8x32xf32> to vector<8x8xf32>
    %115 = vector.extract_strided_slice %106 {offsets = [0, 16], sizes = [8, 8], strides = [1, 1]} : vector<8x32xf32> to vector<8x8xf32>
    %116 = math.tanh %115 : vector<8x8xf32>
    %117 = arith.mulf %114, %116 : vector<8x8xf32>
    %118 = arith.addf %113, %117 : vector<8x8xf32>
    %119 = vector.extract_strided_slice %111 {offsets = [0, 24], sizes = [8, 8], strides = [1, 1]} : vector<8x32xf32> to vector<8x8xf32>
    %120 = math.tanh %118 : vector<8x8xf32>
    %121 = arith.mulf %119, %120 : vector<8x8xf32>
    %c32_39 = arith.constant 32 : index
    %c0_40 = arith.constant 0 : index
    %122 = vector.load %arg16[%c32_39, %c0_40] : memref<64x8xf32, #tpu.memory_space<vmem>>, vector<8x8xf32>
    tpu.vector_store %arg16[%c32_39, %c0_40], %121 {strides = array<i32>} : memref<64x8xf32, #tpu.memory_space<vmem>>, vector<8x8xf32>,
    %123 = vector.extract_strided_slice %32 {offsets = [40, 0], sizes = [8, 32], strides = [1, 1]} : vector<64x32xf32> to vector<8x32xf32>
    %cst_41 = arith.constant dense<0.000000e+00> : vector<8x32xf32>
    %124 = tpu.matmul %121, %27, %cst_41 {dimension_numbers = #tpu.dot_dimension_numbers<[1], [0], [0], [1], [0, 0, 1, 1], [], []>} : vector<8x8xf32>, vector<8x32xf32>, vector<8x32xf32> -> vector<8x32xf32>
    %125 = arith.addf %123, %124 : vector<8x32xf32>
    %126 = arith.negf %125 : vector<8x32xf32>
    %127 = math.exp %126 : vector<8x32xf32>
    %cst_42 = arith.constant 1.000000e+00 : f32
    %128 = vector.broadcast %cst_42 : f32 to vector<8x32xf32>
    %129 = arith.addf %128, %127 : vector<8x32xf32>
    %130 = arith.divf %128, %129 : vector<8x32xf32>
    %131 = vector.extract_strided_slice %130 {offsets = [0, 8], sizes = [8, 8], strides = [1, 1]} : vector<8x32xf32> to vector<8x8xf32>
    %132 = arith.mulf %131, %118 : vector<8x8xf32>
    %133 = vector.extract_strided_slice %130 {offsets = [0, 0], sizes = [8, 8], strides = [1, 1]} : vector<8x32xf32> to vector<8x8xf32>
    %134 = vector.extract_strided_slice %125 {offsets = [0, 16], sizes = [8, 8], strides = [1, 1]} : vector<8x32xf32> to vector<8x8xf32>
    %135 = math.tanh %134 : vector<8x8xf32>
    %136 = arith.mulf %133, %135 : vector<8x8xf32>
    %137 = arith.addf %132, %136 : vector<8x8xf32>
    %138 = vector.extract_strided_slice %130 {offsets = [0, 24], sizes = [8, 8], strides = [1, 1]} : vector<8x32xf32> to vector<8x8xf32>
    %139 = math.tanh %137 : vector<8x8xf32>
    %140 = arith.mulf %138, %139 : vector<8x8xf32>
    %c40 = arith.constant 40 : index
    %c0_43 = arith.constant 0 : index
    %141 = vector.load %arg16[%c40, %c0_43] : memref<64x8xf32, #tpu.memory_space<vmem>>, vector<8x8xf32>
    tpu.vector_store %arg16[%c40, %c0_43], %140 {strides = array<i32>} : memref<64x8xf32, #tpu.memory_space<vmem>>, vector<8x8xf32>,
    %142 = vector.extract_strided_slice %32 {offsets = [48, 0], sizes = [8, 32], strides = [1, 1]} : vector<64x32xf32> to vector<8x32xf32>
    %cst_44 = arith.constant dense<0.000000e+00> : vector<8x32xf32>
    %143 = tpu.matmul %140, %27, %cst_44 {dimension_numbers = #tpu.dot_dimension_numbers<[1], [0], [0], [1], [0, 0, 1, 1], [], []>} : vector<8x8xf32>, vector<8x32xf32>, vector<8x32xf32> -> vector<8x32xf32>
    %144 = arith.addf %142, %143 : vector<8x32xf32>
    %145 = arith.negf %144 : vector<8x32xf32>
    %146 = math.exp %145 : vector<8x32xf32>
    %cst_45 = arith.constant 1.000000e+00 : f32
    %147 = vector.broadcast %cst_45 : f32 to vector<8x32xf32>
    %148 = arith.addf %147, %146 : vector<8x32xf32>
    %149 = arith.divf %147, %148 : vector<8x32xf32>
    %150 = vector.extract_strided_slice %149 {offsets = [0, 8], sizes = [8, 8], strides = [1, 1]} : vector<8x32xf32> to vector<8x8xf32>
    %151 = arith.mulf %150, %137 : vector<8x8xf32>
    %152 = vector.extract_strided_slice %149 {offsets = [0, 0], sizes = [8, 8], strides = [1, 1]} : vector<8x32xf32> to vector<8x8xf32>
    %153 = vector.extract_strided_slice %144 {offsets = [0, 16], sizes = [8, 8], strides = [1, 1]} : vector<8x32xf32> to vector<8x8xf32>
    %154 = math.tanh %153 : vector<8x8xf32>
    %155 = arith.mulf %152, %154 : vector<8x8xf32>
    %156 = arith.addf %151, %155 : vector<8x8xf32>
    %157 = vector.extract_strided_slice %149 {offsets = [0, 24], sizes = [8, 8], strides = [1, 1]} : vector<8x32xf32> to vector<8x8xf32>
    %158 = math.tanh %156 : vector<8x8xf32>
    %159 = arith.mulf %157, %158 : vector<8x8xf32>
    %c48_46 = arith.constant 48 : index
    %c0_47 = arith.constant 0 : index
    %160 = vector.load %arg16[%c48_46, %c0_47] : memref<64x8xf32, #tpu.memory_space<vmem>>, vector<8x8xf32>
    tpu.vector_store %arg16[%c48_46, %c0_47], %159 {strides = array<i32>} : memref<64x8xf32, #tpu.memory_space<vmem>>, vector<8x8xf32>,
    %161 = vector.extract_strided_slice %32 {offsets = [56, 0], sizes = [8, 32], strides = [1, 1]} : vector<64x32xf32> to vector<8x32xf32>
    %cst_48 = arith.constant dense<0.000000e+00> : vector<8x32xf32>
    %162 = tpu.matmul %159, %27, %cst_48 {dimension_numbers = #tpu.dot_dimension_numbers<[1], [0], [0], [1], [0, 0, 1, 1], [], []>} : vector<8x8xf32>, vector<8x32xf32>, vector<8x32xf32> -> vector<8x32xf32>
    %163 = arith.addf %161, %162 : vector<8x32xf32>
    %164 = arith.negf %163 : vector<8x32xf32>
    %165 = math.exp %164 : vector<8x32xf32>
    %cst_49 = arith.constant 1.000000e+00 : f32
    %166 = vector.broadcast %cst_49 : f32 to vector<8x32xf32>
    %167 = arith.addf %166, %165 : vector<8x32xf32>
    %168 = arith.divf %166, %167 : vector<8x32xf32>
    %169 = vector.extract_strided_slice %168 {offsets = [0, 8], sizes = [8, 8], strides = [1, 1]} : vector<8x32xf32> to vector<8x8xf32>
    %170 = arith.mulf %169, %156 : vector<8x8xf32>
    %171 = vector.extract_strided_slice %168 {offsets = [0, 0], sizes = [8, 8], strides = [1, 1]} : vector<8x32xf32> to vector<8x8xf32>
    %172 = vector.extract_strided_slice %163 {offsets = [0, 16], sizes = [8, 8], strides = [1, 1]} : vector<8x32xf32> to vector<8x8xf32>
    %173 = math.tanh %172 : vector<8x8xf32>
    %174 = arith.mulf %171, %173 : vector<8x8xf32>
    %175 = arith.addf %170, %174 : vector<8x8xf32>
    %176 = vector.extract_strided_slice %168 {offsets = [0, 24], sizes = [8, 8], strides = [1, 1]} : vector<8x32xf32> to vector<8x8xf32>
    %177 = math.tanh %175 : vector<8x8xf32>
    %178 = arith.mulf %176, %177 : vector<8x8xf32>
    %c56 = arith.constant 56 : index
    %c0_50 = arith.constant 0 : index
    %179 = vector.load %arg16[%c56, %c0_50] : memref<64x8xf32, #tpu.memory_space<vmem>>, vector<8x8xf32>
    tpu.vector_store %arg16[%c56, %c0_50], %178 {strides = array<i32>} : memref<64x8xf32, #tpu.memory_space<vmem>>, vector<8x8xf32>,
    %c0_51 = arith.constant 0 : index
    %c0_52 = arith.constant 0 : index
    %180 = vector.load %arg16[%c0_51, %c0_52] : memref<64x8xf32, #tpu.memory_space<vmem>>, vector<64x8xf32>
    %c0_53 = arith.constant 0 : index
    %c0_54 = arith.constant 0 : index
    %181 = vector.load %arg9[%c0_53, %c0_54] : memref<8x32xf32, #tpu.memory_space<vmem>>, vector<8x32xf32>
    %c0_55 = arith.constant 0 : index
    %c0_56 = arith.constant 0 : index
    %182 = vector.load %arg8[%c0_55, %c0_56] : memref<8x32xf32, #tpu.memory_space<vmem>>, vector<8x32xf32>
    %cst_57 = arith.constant dense<0.000000e+00> : vector<64x32xf32>
    %183 = tpu.matmul %180, %182, %cst_57 {dimension_numbers = #tpu.dot_dimension_numbers<[1], [0], [0], [1], [0, 0, 1, 1], [], []>} : vector<64x8xf32>, vector<8x32xf32>, vector<64x32xf32> -> vector<64x32xf32>
    %c0_58 = arith.constant 0 : index
    %c0_59 = arith.constant 0 : index
    %184 = vector.load %arg10[%c0_58, %c0_59] : memref<1x32xf32, #tpu.memory_space<vmem>>, vector<1x32xf32>
    %185 = vector.broadcast %184 : vector<1x32xf32> to vector<64x32xf32>
    %186 = arith.addf %183, %185 : vector<64x32xf32>
    %187 = vector.extract_strided_slice %186 {offsets = [0, 0], sizes = [8, 32], strides = [1, 1]} : vector<64x32xf32> to vector<8x32xf32>
    %188 = arith.negf %187 : vector<8x32xf32>
    %189 = math.exp %188 : vector<8x32xf32>
    %cst_60 = arith.constant 1.000000e+00 : f32
    %190 = vector.broadcast %cst_60 : f32 to vector<8x32xf32>
    %191 = arith.addf %190, %189 : vector<8x32xf32>
    %192 = arith.divf %190, %191 : vector<8x32xf32>
    %193 = vector.extract_strided_slice %192 {offsets = [0, 0], sizes = [8, 8], strides = [1, 1]} : vector<8x32xf32> to vector<8x8xf32>
    %194 = vector.extract_strided_slice %187 {offsets = [0, 16], sizes = [8, 8], strides = [1, 1]} : vector<8x32xf32> to vector<8x8xf32>
    %195 = math.tanh %194 : vector<8x8xf32>
    %196 = arith.mulf %193, %195 : vector<8x8xf32>
    %197 = vector.extract_strided_slice %192 {offsets = [0, 24], sizes = [8, 8], strides = [1, 1]} : vector<8x32xf32> to vector<8x8xf32>
    %198 = math.tanh %196 : vector<8x8xf32>
    %199 = arith.mulf %197, %198 : vector<8x8xf32>
    %200 = vector.extract_strided_slice %186 {offsets = [8, 0], sizes = [8, 32], strides = [1, 1]} : vector<64x32xf32> to vector<8x32xf32>
    %cst_61 = arith.constant dense<0.000000e+00> : vector<8x32xf32>
    %201 = tpu.matmul %199, %181, %cst_61 {dimension_numbers = #tpu.dot_dimension_numbers<[1], [0], [0], [1], [0, 0, 1, 1], [], []>} : vector<8x8xf32>, vector<8x32xf32>, vector<8x32xf32> -> vector<8x32xf32>
    %202 = arith.addf %200, %201 : vector<8x32xf32>
    %203 = arith.negf %202 : vector<8x32xf32>
    %204 = math.exp %203 : vector<8x32xf32>
    %cst_62 = arith.constant 1.000000e+00 : f32
    %205 = vector.broadcast %cst_62 : f32 to vector<8x32xf32>
    %206 = arith.addf %205, %204 : vector<8x32xf32>
    %207 = arith.divf %205, %206 : vector<8x32xf32>
    %208 = vector.extract_strided_slice %207 {offsets = [0, 8], sizes = [8, 8], strides = [1, 1]} : vector<8x32xf32> to vector<8x8xf32>
    %209 = arith.mulf %208, %196 : vector<8x8xf32>
    %210 = vector.extract_strided_slice %207 {offsets = [0, 0], sizes = [8, 8], strides = [1, 1]} : vector<8x32xf32> to vector<8x8xf32>
    %211 = vector.extract_strided_slice %202 {offsets = [0, 16], sizes = [8, 8], strides = [1, 1]} : vector<8x32xf32> to vector<8x8xf32>
    %212 = math.tanh %211 : vector<8x8xf32>
    %213 = arith.mulf %210, %212 : vector<8x8xf32>
    %214 = arith.addf %209, %213 : vector<8x8xf32>
    %215 = vector.extract_strided_slice %207 {offsets = [0, 24], sizes = [8, 8], strides = [1, 1]} : vector<8x32xf32> to vector<8x8xf32>
    %216 = math.tanh %214 : vector<8x8xf32>
    %217 = arith.mulf %215, %216 : vector<8x8xf32>
    %218 = arith.maximumf %199, %217 : vector<8x8xf32>
    %219 = vector.extract_strided_slice %186 {offsets = [16, 0], sizes = [8, 32], strides = [1, 1]} : vector<64x32xf32> to vector<8x32xf32>
    %cst_63 = arith.constant dense<0.000000e+00> : vector<8x32xf32>
    %220 = tpu.matmul %217, %181, %cst_63 {dimension_numbers = #tpu.dot_dimension_numbers<[1], [0], [0], [1], [0, 0, 1, 1], [], []>} : vector<8x8xf32>, vector<8x32xf32>, vector<8x32xf32> -> vector<8x32xf32>
    %221 = arith.addf %219, %220 : vector<8x32xf32>
    %222 = arith.negf %221 : vector<8x32xf32>
    %223 = math.exp %222 : vector<8x32xf32>
    %cst_64 = arith.constant 1.000000e+00 : f32
    %224 = vector.broadcast %cst_64 : f32 to vector<8x32xf32>
    %225 = arith.addf %224, %223 : vector<8x32xf32>
    %226 = arith.divf %224, %225 : vector<8x32xf32>
    %227 = vector.extract_strided_slice %226 {offsets = [0, 8], sizes = [8, 8], strides = [1, 1]} : vector<8x32xf32> to vector<8x8xf32>
    %228 = arith.mulf %227, %214 : vector<8x8xf32>
    %229 = vector.extract_strided_slice %226 {offsets = [0, 0], sizes = [8, 8], strides = [1, 1]} : vector<8x32xf32> to vector<8x8xf32>
    %230 = vector.extract_strided_slice %221 {offsets = [0, 16], sizes = [8, 8], strides = [1, 1]} : vector<8x32xf32> to vector<8x8xf32>
    %231 = math.tanh %230 : vector<8x8xf32>
    %232 = arith.mulf %229, %231 : vector<8x8xf32>
    %233 = arith.addf %228, %232 : vector<8x8xf32>
    %234 = vector.extract_strided_slice %226 {offsets = [0, 24], sizes = [8, 8], strides = [1, 1]} : vector<8x32xf32> to vector<8x8xf32>
    %235 = math.tanh %233 : vector<8x8xf32>
    %236 = arith.mulf %234, %235 : vector<8x8xf32>
    %237 = arith.maximumf %218, %236 : vector<8x8xf32>
    %238 = vector.extract_strided_slice %186 {offsets = [24, 0], sizes = [8, 32], strides = [1, 1]} : vector<64x32xf32> to vector<8x32xf32>
    %cst_65 = arith.constant dense<0.000000e+00> : vector<8x32xf32>
    %239 = tpu.matmul %236, %181, %cst_65 {dimension_numbers = #tpu.dot_dimension_numbers<[1], [0], [0], [1], [0, 0, 1, 1], [], []>} : vector<8x8xf32>, vector<8x32xf32>, vector<8x32xf32> -> vector<8x32xf32>
    %240 = arith.addf %238, %239 : vector<8x32xf32>
    %241 = arith.negf %240 : vector<8x32xf32>
    %242 = math.exp %241 : vector<8x32xf32>
    %cst_66 = arith.constant 1.000000e+00 : f32
    %243 = vector.broadcast %cst_66 : f32 to vector<8x32xf32>
    %244 = arith.addf %243, %242 : vector<8x32xf32>
    %245 = arith.divf %243, %244 : vector<8x32xf32>
    %246 = vector.extract_strided_slice %245 {offsets = [0, 8], sizes = [8, 8], strides = [1, 1]} : vector<8x32xf32> to vector<8x8xf32>
    %247 = arith.mulf %246, %233 : vector<8x8xf32>
    %248 = vector.extract_strided_slice %245 {offsets = [0, 0], sizes = [8, 8], strides = [1, 1]} : vector<8x32xf32> to vector<8x8xf32>
    %249 = vector.extract_strided_slice %240 {offsets = [0, 16], sizes = [8, 8], strides = [1, 1]} : vector<8x32xf32> to vector<8x8xf32>
    %250 = math.tanh %249 : vector<8x8xf32>
    %251 = arith.mulf %248, %250 : vector<8x8xf32>
    %252 = arith.addf %247, %251 : vector<8x8xf32>
    %253 = vector.extract_strided_slice %245 {offsets = [0, 24], sizes = [8, 8], strides = [1, 1]} : vector<8x32xf32> to vector<8x8xf32>
    %254 = math.tanh %252 : vector<8x8xf32>
    %255 = arith.mulf %253, %254 : vector<8x8xf32>
    %256 = arith.maximumf %237, %255 : vector<8x8xf32>
    %257 = vector.extract_strided_slice %186 {offsets = [32, 0], sizes = [8, 32], strides = [1, 1]} : vector<64x32xf32> to vector<8x32xf32>
    %cst_67 = arith.constant dense<0.000000e+00> : vector<8x32xf32>
    %258 = tpu.matmul %255, %181, %cst_67 {dimension_numbers = #tpu.dot_dimension_numbers<[1], [0], [0], [1], [0, 0, 1, 1], [], []>} : vector<8x8xf32>, vector<8x32xf32>, vector<8x32xf32> -> vector<8x32xf32>
    %259 = arith.addf %257, %258 : vector<8x32xf32>
    %260 = arith.negf %259 : vector<8x32xf32>
    %261 = math.exp %260 : vector<8x32xf32>
    %cst_68 = arith.constant 1.000000e+00 : f32
    %262 = vector.broadcast %cst_68 : f32 to vector<8x32xf32>
    %263 = arith.addf %262, %261 : vector<8x32xf32>
    %264 = arith.divf %262, %263 : vector<8x32xf32>
    %265 = vector.extract_strided_slice %264 {offsets = [0, 8], sizes = [8, 8], strides = [1, 1]} : vector<8x32xf32> to vector<8x8xf32>
    %266 = arith.mulf %265, %252 : vector<8x8xf32>
    %267 = vector.extract_strided_slice %264 {offsets = [0, 0], sizes = [8, 8], strides = [1, 1]} : vector<8x32xf32> to vector<8x8xf32>
    %268 = vector.extract_strided_slice %259 {offsets = [0, 16], sizes = [8, 8], strides = [1, 1]} : vector<8x32xf32> to vector<8x8xf32>
    %269 = math.tanh %268 : vector<8x8xf32>
    %270 = arith.mulf %267, %269 : vector<8x8xf32>
    %271 = arith.addf %266, %270 : vector<8x8xf32>
    %272 = vector.extract_strided_slice %264 {offsets = [0, 24], sizes = [8, 8], strides = [1, 1]} : vector<8x32xf32> to vector<8x8xf32>
    %273 = math.tanh %271 : vector<8x8xf32>
    %274 = arith.mulf %272, %273 : vector<8x8xf32>
    %275 = arith.maximumf %256, %274 : vector<8x8xf32>
    %276 = vector.extract_strided_slice %186 {offsets = [40, 0], sizes = [8, 32], strides = [1, 1]} : vector<64x32xf32> to vector<8x32xf32>
    %cst_69 = arith.constant dense<0.000000e+00> : vector<8x32xf32>
    %277 = tpu.matmul %274, %181, %cst_69 {dimension_numbers = #tpu.dot_dimension_numbers<[1], [0], [0], [1], [0, 0, 1, 1], [], []>} : vector<8x8xf32>, vector<8x32xf32>, vector<8x32xf32> -> vector<8x32xf32>
    %278 = arith.addf %276, %277 : vector<8x32xf32>
    %279 = arith.negf %278 : vector<8x32xf32>
    %280 = math.exp %279 : vector<8x32xf32>
    %cst_70 = arith.constant 1.000000e+00 : f32
    %281 = vector.broadcast %cst_70 : f32 to vector<8x32xf32>
    %282 = arith.addf %281, %280 : vector<8x32xf32>
    %283 = arith.divf %281, %282 : vector<8x32xf32>
    %284 = vector.extract_strided_slice %283 {offsets = [0, 8], sizes = [8, 8], strides = [1, 1]} : vector<8x32xf32> to vector<8x8xf32>
    %285 = arith.mulf %284, %271 : vector<8x8xf32>
    %286 = vector.extract_strided_slice %283 {offsets = [0, 0], sizes = [8, 8], strides = [1, 1]} : vector<8x32xf32> to vector<8x8xf32>
    %287 = vector.extract_strided_slice %278 {offsets = [0, 16], sizes = [8, 8], strides = [1, 1]} : vector<8x32xf32> to vector<8x8xf32>
    %288 = math.tanh %287 : vector<8x8xf32>
    %289 = arith.mulf %286, %288 : vector<8x8xf32>
    %290 = arith.addf %285, %289 : vector<8x8xf32>
    %291 = vector.extract_strided_slice %283 {offsets = [0, 24], sizes = [8, 8], strides = [1, 1]} : vector<8x32xf32> to vector<8x8xf32>
    %292 = math.tanh %290 : vector<8x8xf32>
    %293 = arith.mulf %291, %292 : vector<8x8xf32>
    %294 = arith.maximumf %275, %293 : vector<8x8xf32>
    %295 = vector.extract_strided_slice %186 {offsets = [48, 0], sizes = [8, 32], strides = [1, 1]} : vector<64x32xf32> to vector<8x32xf32>
    %cst_71 = arith.constant dense<0.000000e+00> : vector<8x32xf32>
    %296 = tpu.matmul %293, %181, %cst_71 {dimension_numbers = #tpu.dot_dimension_numbers<[1], [0], [0], [1], [0, 0, 1, 1], [], []>} : vector<8x8xf32>, vector<8x32xf32>, vector<8x32xf32> -> vector<8x32xf32>
    %297 = arith.addf %295, %296 : vector<8x32xf32>
    %298 = arith.negf %297 : vector<8x32xf32>
    %299 = math.exp %298 : vector<8x32xf32>
    %cst_72 = arith.constant 1.000000e+00 : f32
    %300 = vector.broadcast %cst_72 : f32 to vector<8x32xf32>
    %301 = arith.addf %300, %299 : vector<8x32xf32>
    %302 = arith.divf %300, %301 : vector<8x32xf32>
    %303 = vector.extract_strided_slice %302 {offsets = [0, 8], sizes = [8, 8], strides = [1, 1]} : vector<8x32xf32> to vector<8x8xf32>
    %304 = arith.mulf %303, %290 : vector<8x8xf32>
    %305 = vector.extract_strided_slice %302 {offsets = [0, 0], sizes = [8, 8], strides = [1, 1]} : vector<8x32xf32> to vector<8x8xf32>
    %306 = vector.extract_strided_slice %297 {offsets = [0, 16], sizes = [8, 8], strides = [1, 1]} : vector<8x32xf32> to vector<8x8xf32>
    %307 = math.tanh %306 : vector<8x8xf32>
    %308 = arith.mulf %305, %307 : vector<8x8xf32>
    %309 = arith.addf %304, %308 : vector<8x8xf32>
    %310 = vector.extract_strided_slice %302 {offsets = [0, 24], sizes = [8, 8], strides = [1, 1]} : vector<8x32xf32> to vector<8x8xf32>
    %311 = math.tanh %309 : vector<8x8xf32>
    %312 = arith.mulf %310, %311 : vector<8x8xf32>
    %313 = arith.maximumf %294, %312 : vector<8x8xf32>
    %314 = vector.extract_strided_slice %186 {offsets = [56, 0], sizes = [8, 32], strides = [1, 1]} : vector<64x32xf32> to vector<8x32xf32>
    %cst_73 = arith.constant dense<0.000000e+00> : vector<8x32xf32>
    %315 = tpu.matmul %312, %181, %cst_73 {dimension_numbers = #tpu.dot_dimension_numbers<[1], [0], [0], [1], [0, 0, 1, 1], [], []>} : vector<8x8xf32>, vector<8x32xf32>, vector<8x32xf32> -> vector<8x32xf32>
    %316 = arith.addf %314, %315 : vector<8x32xf32>
    %317 = arith.negf %316 : vector<8x32xf32>
    %318 = math.exp %317 : vector<8x32xf32>
    %cst_74 = arith.constant 1.000000e+00 : f32
    %319 = vector.broadcast %cst_74 : f32 to vector<8x32xf32>
    %320 = arith.addf %319, %318 : vector<8x32xf32>
    %321 = arith.divf %319, %320 : vector<8x32xf32>
    %322 = vector.extract_strided_slice %321 {offsets = [0, 8], sizes = [8, 8], strides = [1, 1]} : vector<8x32xf32> to vector<8x8xf32>
    %323 = arith.mulf %322, %309 : vector<8x8xf32>
    %324 = vector.extract_strided_slice %321 {offsets = [0, 0], sizes = [8, 8], strides = [1, 1]} : vector<8x32xf32> to vector<8x8xf32>
    %325 = vector.extract_strided_slice %316 {offsets = [0, 16], sizes = [8, 8], strides = [1, 1]} : vector<8x32xf32> to vector<8x8xf32>
    %326 = math.tanh %325 : vector<8x8xf32>
    %327 = arith.mulf %324, %326 : vector<8x8xf32>
    %328 = arith.addf %323, %327 : vector<8x8xf32>
    %329 = vector.extract_strided_slice %321 {offsets = [0, 24], sizes = [8, 8], strides = [1, 1]} : vector<8x32xf32> to vector<8x8xf32>
    %330 = math.tanh %328 : vector<8x8xf32>
    %331 = arith.mulf %329, %330 : vector<8x8xf32>
    %332 = arith.maximumf %313, %331 : vector<8x8xf32>
    %333 = tpu.concatenate %25, %332 in 1 : vector<8x12xf32>, vector<8x8xf32> -> vector<8x20xf32>
    %334 = math.tanh %333 : vector<8x20xf32>
    %c0_75 = arith.constant 0 : index
    %c0_76 = arith.constant 0 : index
    %335 = vector.load %arg11[%c0_75, %c0_76] : memref<20x10xf32, #tpu.memory_space<vmem>>, vector<20x10xf32>
    %cst_77 = arith.constant dense<0.000000e+00> : vector<8x10xf32>
    %336 = tpu.matmul %334, %335, %cst_77 {dimension_numbers = #tpu.dot_dimension_numbers<[1], [0], [0], [1], [0, 0, 1, 1], [], []>} : vector<8x20xf32>, vector<20x10xf32>, vector<8x10xf32> -> vector<8x10xf32>
    %c0_78 = arith.constant 0 : index
    %c0_79 = arith.constant 0 : index
    %337 = vector.load %arg12[%c0_78, %c0_79] : memref<1x10xf32, #tpu.memory_space<vmem>>, vector<1x10xf32>
    %338 = vector.broadcast %337 : vector<1x10xf32> to vector<8x10xf32>
    %339 = arith.addf %336, %338 : vector<8x10xf32>
    %340 = math.tanh %339 : vector<8x10xf32>
    %c0_80 = arith.constant 0 : index
    %c0_81 = arith.constant 0 : index
    %341 = vector.load %arg13[%c0_80, %c0_81] : memref<10x3xf32, #tpu.memory_space<vmem>>, vector<10x3xf32>
    %cst_82 = arith.constant dense<0.000000e+00> : vector<8x3xf32>
    %342 = tpu.matmul %340, %341, %cst_82 {dimension_numbers = #tpu.dot_dimension_numbers<[1], [0], [0], [1], [0, 0, 1, 1], [], []>} : vector<8x10xf32>, vector<10x3xf32>, vector<8x3xf32> -> vector<8x3xf32>
    %c0_83 = arith.constant 0 : index
    %c0_84 = arith.constant 0 : index
    %343 = vector.load %arg14[%c0_83, %c0_84] : memref<1x3xf32, #tpu.memory_space<vmem>>, vector<1x3xf32>
    %344 = vector.broadcast %343 : vector<1x3xf32> to vector<8x3xf32>
    %345 = arith.addf %342, %344 : vector<8x3xf32>
    %c0_85 = arith.constant 0 : index
    %c0_86 = arith.constant 0 : index
    %346 = vector.load %arg15[%c0_85, %c0_86] : memref<8x3xf32, #tpu.memory_space<vmem>>, vector<8x3xf32>
    tpu.vector_store %arg15[%c0_85, %c0_86], %345 {strides = array<i32>} : memref<8x3xf32, #tpu.memory_space<vmem>>, vector<8x3xf32>,
    return
  }
  func.func @transform_0(%arg0: i32) -> (i32, i32, i32) {
    %c0_i32 = arith.constant 0 : i32
    %c0_i32_0 = arith.constant 0 : i32
    %c0_i32_1 = arith.constant 0 : i32
    return %c0_i32, %arg0, %c0_i32_0 : i32, i32, i32
  }
  func.func @transform_1(%arg0: i32) -> (i32, i32) {
    %c0_i32 = arith.constant 0 : i32
    %c0_i32_0 = arith.constant 0 : i32
    %c0_i32_1 = arith.constant 0 : i32
    return %c0_i32, %c0_i32_0 : i32, i32
  }
  func.func @transform_2(%arg0: i32) -> (i32, i32) {
    %c0_i32 = arith.constant 0 : i32
    %c0_i32_0 = arith.constant 0 : i32
    %c0_i32_1 = arith.constant 0 : i32
    return %c0_i32, %c0_i32_0 : i32, i32
  }
  func.func @transform_3(%arg0: i32) -> (i32, i32, i32) {
    %c0_i32 = arith.constant 0 : i32
    %c0_i32_0 = arith.constant 0 : i32
    %c0_i32_1 = arith.constant 0 : i32
    %c0_i32_2 = arith.constant 0 : i32
    return %c0_i32, %c0_i32_0, %c0_i32_1 : i32, i32, i32
  }
  func.func @transform_4(%arg0: i32) -> (i32, i32) {
    %c0_i32 = arith.constant 0 : i32
    %c0_i32_0 = arith.constant 0 : i32
    %c0_i32_1 = arith.constant 0 : i32
    return %c0_i32, %c0_i32_0 : i32, i32
  }
  func.func @transform_5(%arg0: i32) -> (i32, i32) {
    %c0_i32 = arith.constant 0 : i32
    %c0_i32_0 = arith.constant 0 : i32
    %c0_i32_1 = arith.constant 0 : i32
    return %c0_i32, %c0_i32_0 : i32, i32
  }
  func.func @transform_6(%arg0: i32) -> (i32, i32) {
    %c0_i32 = arith.constant 0 : i32
    %c0_i32_0 = arith.constant 0 : i32
    %c0_i32_1 = arith.constant 0 : i32
    return %c0_i32, %c0_i32_0 : i32, i32
  }
  func.func @transform_7(%arg0: i32) -> (i32, i32) {
    %c0_i32 = arith.constant 0 : i32
    %c0_i32_0 = arith.constant 0 : i32
    %c0_i32_1 = arith.constant 0 : i32
    return %c0_i32, %c0_i32_0 : i32, i32
  }
  func.func @transform_8(%arg0: i32) -> (i32, i32) {
    %c0_i32 = arith.constant 0 : i32
    %c0_i32_0 = arith.constant 0 : i32
    %c0_i32_1 = arith.constant 0 : i32
    return %c0_i32, %c0_i32_0 : i32, i32
  }
  func.func @transform_9(%arg0: i32) -> (i32, i32) {
    %c0_i32 = arith.constant 0 : i32
    %c0_i32_0 = arith.constant 0 : i32
    %c0_i32_1 = arith.constant 0 : i32
    return %c0_i32, %c0_i32_0 : i32, i32
  }
  func.func @transform_10(%arg0: i32) -> (i32, i32) {
    %c0_i32 = arith.constant 0 : i32
    %c0_i32_0 = arith.constant 0 : i32
    %c0_i32_1 = arith.constant 0 : i32
    return %c0_i32, %c0_i32_0 : i32, i32
  }
  func.func @transform_11(%arg0: i32) -> (i32, i32) {
    %c0_i32 = arith.constant 0 : i32
    %c0_i32_0 = arith.constant 0 : i32
    %c0_i32_1 = arith.constant 0 : i32
    return %c0_i32, %c0_i32_0 : i32, i32
  }
  func.func @transform_12(%arg0: i32) -> (i32, i32) {
    %c0_i32 = arith.constant 0 : i32
    %c0_i32_0 = arith.constant 0 : i32
    %c0_i32_1 = arith.constant 0 : i32
    return %c0_i32, %c0_i32_0 : i32, i32
  }
  func.func @transform_13(%arg0: i32) -> (i32, i32) {
    %c0_i32 = arith.constant 0 : i32
    %c0_i32_0 = arith.constant 0 : i32
    %c0_i32_1 = arith.constant 0 : i32
    return %c0_i32, %c0_i32_0 : i32, i32
  }
  func.func @transform_14(%arg0: i32) -> (i32, i32) {
    %c0_i32 = arith.constant 0 : i32
    %c0_i32_0 = arith.constant 0 : i32
    return %arg0, %c0_i32 : i32, i32
  }
}

</mosaic_0001>

<bundles_post_ra>
// kernel: tpu_custom_call.1
= control target key start
LH: loop header
LB: loop body
LE: loop exit
PB: predicated region body
PF: predicated region fallthrough
CT: control target
= control target key end

     0   :  { %19 = vsyncpa [#allocation4], 0  ;;  %s2279_s0 = inlined_call_operand.vmem [shape: f32[10,8,16], index: 0, kind: input, shape index: {}]   ;;  %s2280_s1 = inlined_call_operand.vmem [shape: f32[64,12], index: 1, kind: input, shape index: {}]   ;;  %s2281_s2 = inlined_call_operand.vmem [shape: f32[1,12], index: 2, kind: input, shape index: {}]   ;;  %s2282_s3 = inlined_call_operand.hbm [shape: f32[7,8,12], index: 3, kind: input, shape index: {}]   ;;  %s2283_s4 = inlined_call_operand.vmem [shape: f32[16,32], index: 4, kind: input, shape index: {}]   ;;  %s2284_s5 = inlined_call_operand.vmem [shape: f32[8,32], index: 5, kind: input, shape index: {}]   ;;  %s2285_s6 = inlined_call_operand.vmem [shape: f32[1,32], index: 6, kind: input, shape index: {}]   ;;  %s2286_s7 = inlined_call_operand.vmem [shape: f32[8,32], index: 7, kind: input, shape index: {}]   ;;  %s2287_s8 = inlined_call_operand.hbm [shape: f32[8,32], index: 8, kind: input, shape index: {}]   ;;  %s2288_s9 = inlined_call_operand.hbm [shape: f32[1,32], index: 9, kind: input, shape index: {}]   ;;  %s2289_s10 = inlined_call_operand.vmem [shape: f32[20,10], index: 10, kind: input, shape index: {}]   ;;  %s2290_s11 = inlined_call_operand.hbm [shape: f32[1,10], index: 11, kind: input, shape index: {}]   ;;  %s2291_s12 = inlined_call_operand.vmem [shape: f32[10,3], index: 12, kind: input, shape index: {}]   ;;  %s2292_s13 = inlined_call_operand.vmem [shape: f32[1,3], index: 13, kind: input, shape index: {}]   ;;  %s2293_s14 = inlined_call_operand.vmem [shape: f32[8,3], index: 14, kind: output, shape index: {}]  }
   0x1   :  { %20 = vsyncpa [#allocation6], 0  ;;  %s54_s15 = sshll.u32 %s2287_s8, 4  ;;  %s55_s15 = int_to_ptr.hbm [resolvable:$true] %s54_s15 }
   0x2   :  { %21 = vsyncpa [#allocation9], 0  ;;  %s1877_s16 = smov [#allocation5]   ;;  %s32_s20 = sshll.u32 %s2282_s3, 4  ;;  %s33_s20 = int_to_ptr.hbm [resolvable:$true] %s32_s20 }
   0x3   :  { %s56_s17 = sshll.u32 %s1877_s16, 4  ;;  %s1878_s21 = smov [#allocation3]   ;;  %s57_s17 = int_to_ptr.vmem [resolvable:$true] %s56_s17 }
   0x4   :  { %59 = dma.hbm_to_vmem [thread:$0]  %s55_s15, 128, %s57_s17, [#allocation6]  }
   0x5   :  { %s34_s22 = sshll.u32 %s1878_s21, 4  ;;  %s1879_s23 = smov 128   ;;  %s35_s22 = int_to_ptr.vmem [resolvable:$true] %s34_s22 }
   0x6   :  { %s1880_s24 = smov 8   ;;  %s65_s26 = sshll.u32 %s2288_s9, 4  ;;  %s66_s26 = int_to_ptr.hbm [resolvable:$true] %s65_s26 }
   0x7   :  { %40 = dma.hbm_to_vmem [thread:$0]  %s33_s20, 896, %s35_s22, [#allocation4], %s1879_s23, %s1879_s23, %s1880_s24  }
   0x8   :  { %s1881_s27 = smov [#allocation7]   ;;  %s78_s3 = sshll.u32 %s2290_s11, 4  ;;  %s79_s3 = int_to_ptr.hbm [resolvable:$true] %s78_s3 }
   0x9   :  { %s67_s28 = sshll.u32 %s1881_s27, 4  ;;  %s1882_s15 = smov [#allocation8]   ;;  %s68_s28 = int_to_ptr.vmem [resolvable:$true] %s67_s28 }
   0xa   :  { %70 = dma.hbm_to_vmem [thread:$0]  %s66_s26, 16, %s68_s28, [#allocation6]  }
   0xb   :  { %s80_s16 = sshll.u32 %s1882_s15, 4  ;;  %s81_s16 = int_to_ptr.vmem [resolvable:$true] %s80_s16 }
   0xc   :  { %83 = dma.hbm_to_vmem [thread:$0]  %s79_s3, 16, %s81_s16, [#allocation9]  }
   0xd   :  { %1871 = dma.done.wait [#allocation4], 896  }
   0xe   :  { %1872 = vsyncadd [#allocation4], 4294966400 }
   0xf   :  { %1873 = dma.done.wait [#allocation6], 144  }
  0x10   :  { %1874 = vsyncadd [#allocation6], 4294967152 }
  0x11   :  { %1875 = dma.done.wait [#allocation9], 16  }
  0x12   :  { %1876 = vsyncadd [#allocation9], 4294967280  ;;  %v117_v0 = vld [vmem:[%s2280_s1 + $0x18] sm:$0xff]  ;;  %v115_v1 = vld [vmem:[%s2280_s1 + $0x8] sm:$0xff]  ;;  %vm118_vm0 = vcmask 130048   ;;  %vm333_vm1 = vcmask 97280  }
  0x13   :  { %v116_v2 = vld [vmem:[%s2280_s1 + $0x10] sm:$0xff]  ;;  %154 = vmatpush.msra.mxu0 %v117_v0  ;;  %195 = vmatpush.msra.mxu1 %v115_v1  ;;  %v114_v3 = vld [vmem:[%s2280_s1] sm:$0xff]  ;;  %v105_v4 = vld [vmem:[%s2279_s0 + $0x8] sm:$0xff]  ;;  %s1883_s17 = smov 112   ;;  %s1884_s18 = smov 24   ;;  %vm436_vm6 = vcmask 64512  }
  0x14   :  { %1622 = vmatpush.msra.mxu3 %v115_v1  ;;  %v104_v5 = vld [vmem:[%s2279_s0] sm:$0xff]  ;;  %v110_v6 = vld [vmem:[%s2279_s0 + $0x30] sm:$0xff]  ;;  %v355_v7 = vld [vmem:[%s2283_s4 + $0x8] sm:$0xff]  ;;  %s1885_s20 = smov 104  }
  0x15   :  { %155 = vmatpush.msra.mxu0 %v116_v2  ;;  %196 = vmatpush.msra.mxu1 %v114_v3  ;;  %v270_v8 = vld [vmem:[%s2280_s1 + $0x38] sm:$0xff]  ;;  %v220_v9 = vld [vmem:[%s2280_s1 + $0x28] sm:$0xff]  ;;  %v269_v10 = vld [vmem:[%s2280_s1 + $0x30] sm:$0xff] }
  0x16   :  { %1623 = vmatpush.msra.mxu3 %v114_v3  ;;  %1544 = vmatmul.msk.f32.vlgmr.msra.gmra.mxu0 %vm118_vm0, %v105_v4  ;;  %v219_v11 = vld [vmem:[%s2280_s1 + $0x20] sm:$0xff]  ;;  %v106_v14 = vld [vmem:[%s2279_s0 + $0x10] sm:$0xff]  ;;  %v107_v15 = vld [vmem:[%s2279_s0 + $0x18] sm:$0xff] }
  0x17   :  { %1551 = vmatmul.msk.f32.vlgmr.msra.gmra.mxu1 %vm118_vm0, %v104_v5  ;;  %1557 = vmatmul.msk.f32.vlgmr.msra.gmra.mxu3 %vm118_vm0, %v110_v6  ;;  %v354_v12 = vld [vmem:[%s2283_s4] sm:$0xff]  ;;  %v109_v16 = vld [vmem:[%s2279_s0 + $0x28] sm:$0xff]  ;;  %v111_v17 = vld [vmem:[%s2279_s0 + $0x38] sm:$0xff] }
  0x18   :  { %374 = vmatpush.msrb.mxu0 %v355_v7  ;;  %288 = vmatpush.msrb.mxu3 %v270_v8  ;;  %v108_v13 = vld [vmem:[%s2279_s0 + $0x20] sm:$0xff]  ;;  %v113_v19 = vld [vmem:[%s2279_s0 + $0x48] sm:$0xff] }
  0x19   :  { %1624 = vmatpush.msra.mxu2 %v220_v9  ;;  %238 = vmatpush.msrb.mxu1 %v220_v9  ;;  %v112_v18 = vld [vmem:[%s2279_s0 + $0x40] sm:$0xff]  ;;  %v324_v7 = vld [vmem:[#allocation3 + $0x28] sm:$0xff] }
  0x1a   :  { %289 = vmatpush.msrb.mxu3 %v269_v10  ;;  %375 = vmatpush.msrb.mxu0 %v354_v12  ;;  %v323_v56 = vld [vmem:[#allocation3 + $0x20] sm:$0xff]  ;;  %v320_v12 = vld [vmem:[#allocation3 + $0x8] sm:$0xff] }
  0x1b   :  { %1625 = vmatpush.msra.mxu2 %v219_v11  ;;  %239 = vmatpush.msrb.mxu1 %v219_v11  ;;  %v319_v60 = vld [vmem:[#allocation3] sm:$0xff] }
  0x1c   :  { %1560 = vmatmul.msk.f32.vlgmr.msra.gmra.mxu2 %vm118_vm0, %v108_v13  ;;  %v2075_v63 = vld [vmem:[%s2285_s6] ss:$0 sm:$0xff] }
  0x1e   :  { %1545 = vmatmul.msk.f32.gmra.mxu0 %vm118_vm0, %v106_v14 }
  0x1f   :  { %1552 = vmatmul.msk.f32.gmra.mxu1 %vm118_vm0, %v105_v4  ;;  %1565 = vmatmul.msk.f32.vlgmr.msrb.gmra.mxu3 %vm118_vm0, %v107_v15 }
  0x24   :  { %1561 = vmatmul.msk.f32.gmra.mxu2 %vm118_vm0, %v109_v16 }
  0x26   :  { %1546 = vmatmul.msk.f32.gmra.mxu0 %vm118_vm0, %v107_v15 }
  0x27   :  { %1553 = vmatmul.msk.f32.gmra.mxu1 %vm118_vm0, %v106_v14  ;;  %1566 = vmatmul.msk.f32.gmra.mxu3 %vm118_vm0, %v108_v13 }
  0x2c   :  { %1562 = vmatmul.msk.f32.gmra.mxu2 %vm118_vm0, %v110_v6 }
  0x2e   :  { %1547 = vmatmul.msk.f32.gmra.mxu0 %vm118_vm0, %v108_v13 }
  0x2f   :  { %1554 = vmatmul.msk.f32.gmra.mxu1 %vm118_vm0, %v107_v15  ;;  %1567 = vmatmul.msk.f32.gmra.mxu3 %vm118_vm0, %v109_v16 }
  0x34   :  { %1563 = vmatmul.msk.f32.gmra.mxu2 %vm118_vm0, %v111_v17 }
  0x36   :  { %1548 = vmatmul.msk.f32.gmra.mxu0 %vm118_vm0, %v109_v16 }
  0x37   :  { %1555 = vmatmul.msk.f32.gmra.mxu1 %vm118_vm0, %v108_v13  ;;  %1568 = vmatmul.msk.f32.gmra.mxu3 %vm118_vm0, %v110_v6 }
  0x3c   :  { %1564 = vmatmul.msk.f32.gmra.mxu2 %vm118_vm0, %v112_v18 }
  0x3e   :  { %1549 = vmatmul.msk.f32.gmra.mxu0 %vm118_vm0, %v110_v6 }
  0x3f   :  { %1556 = vmatmul.msk.f32.gmra.mxu1 %vm118_vm0, %v109_v16  ;;  %1569 = vmatmul.msk.f32.gmra.mxu3 %vm118_vm0, %v111_v17 }
  0x46   :  { %1550 = vmatmul.msk.f32.gmra.mxu0 %vm118_vm0, %v111_v17 }
  0x47   :  { %1558 = vmatmul.msk.f32.vlgmr.msrb.gmra.mxu1 %vm118_vm0, %v106_v14  ;;  %1570 = vmatmul.msk.f32.gmra.mxu3 %vm118_vm0, %v112_v18  ;;  %v322_v18 = vld [vmem:[#allocation3 + $0x18] sm:$0xff] }
  0x4e   :  { %1572 = vmatmul.msk.f32.vlgmr.msrb.gmra.mxu0 %vm118_vm0, %v104_v5 }
  0x4f   :  { %1559 = vmatmul.msk.f32.gmra.mxu1 %vm118_vm0, %v107_v15  ;;  %1571 = vmatmul.msk.f32.gmra.mxu3 %vm118_vm0, %v113_v19 }
  0x56   :  { %1573 = vmatmul.msk.f32.gmra.mxu0 %vm118_vm0, %v105_v4 }
  0x5e   :  { %1574 = vmatmul.msk.f32.gmra.mxu0 %vm118_vm0, %v106_v14 }
  0x66   :  { %1575 = vmatmul.msk.f32.gmra.mxu0 %vm118_vm0, %v107_v15  ;;  %v321_v15 = vld [vmem:[#allocation3 + $0x10] sm:$0xff] }
  0x6e   :  { %1576 = vmatmul.msk.f32.gmra.mxu0 %vm118_vm0, %v108_v13 }
  0x76   :  { %1577 = vmatmul.msk.f32.gmra.mxu0 %vm118_vm0, %v109_v16 }
  0x7e   :  { %1578 = vmatmul.msk.f32.gmra.mxu0 %vm118_vm0, %v110_v6 }
  0x86   :  { %1579 = vmatmul.msk.f32.gmra.mxu0 %vm118_vm0, %v111_v17 }
  0x93   :  { %v157_v20 = vpop.f32.mrf.mxu0 }
  0x94   :  { %v198_v21 = vpop.f32.mrf.mxu1 }
  0x95   :  { %v199_v22 = vadd.f32 %v198_v21, %v157_v20  ;;  %v325_v20 = vld [vmem:[#allocation3 + $0x30] sm:$0xff] }
  0x9a   :  { %v216_v23 = vpop.f32.mrf.mxu3 }
  0x9b   :  { %v160_v24 = vpop.f32.mrf.mxu0 }
  0x9c   :  { %v201_v25 = vpop.f32.mrf.mxu1 }
  0x9d   :  { %v202_v26 = vadd.f32 %v201_v25, %v160_v24 }
  0x9f   :  { %v247_v27 = vpop.f32.mrf.mxu2 }
  0xa2   :  { %v291_v28 = vpop.f32.mrf.mxu3 }
  0xa3   :  { %v163_v29 = vpop.f32.mrf.mxu0 }
  0xa4   :  { %v204_v30 = vpop.f32.mrf.mxu1 }
  0xa5   :  { %v205_v31 = vadd.f32 %v204_v30, %v163_v29 }
  0xa7   :  { %v264_v32 = vadd.f32 %v247_v27, %v205_v31  ;;  %v250_v33 = vpop.f32.mrf.mxu2 }
  0xaa   :  { %v294_v34 = vpop.f32.mrf.mxu3 }
  0xab   :  { %v166_v35 = vpop.f32.mrf.mxu0 }
  0xac   :  { %v207_v36 = vpop.f32.mrf.mxu1 }
  0xad   :  { %v208_v37 = vadd.f32 %v207_v36, %v166_v35 }
  0xaf   :  { %v265_v38 = vadd.f32 %v250_v33, %v208_v37  ;;  %v253_v40 = vpop.f32.mrf.mxu2 }
  0xb2   :  { %v297_v39 = vpop.f32.mrf.mxu3 }
  0xb3   :  { %v314_v41 = vadd.f32 %v297_v39, %v264_v32  ;;  %v169_v42 = vpop.f32.mrf.mxu0 }
  0xb4   :  { %v210_v43 = vpop.f32.mrf.mxu1 }
  0xb5   :  { %v211_v44 = vadd.f32 %v210_v43, %v169_v42  ;;  %v328_v21 = vadd.f32 %v321_v15, %v314_v41 }
  0xb7   :  { %v266_v45 = vadd.f32 %v253_v40, %v211_v44  ;;  %v256_v50 = vpop.f32.mrf.mxu2  ;;  %v336_v30 = vsel %vm333_vm1, %v328_v21, -inf }
  0xba   :  { %v300_v46 = vpop.f32.mrf.mxu3 }
  0xbb   :  { %v315_v47 = vadd.f32 %v300_v46, %v265_v38  ;;  %v172_v48 = vpop.f32.mrf.mxu0 }
  0xbc   :  { %v213_v49 = vpop.f32.mrf.mxu1 }
  0xbd   :  { %v214_v51 = vadd.f32 %v213_v49, %v172_v48 }
  0xbf   :  { %v267_v52 = vadd.f32 %v256_v50, %v214_v51  ;;  %v259_v11 = vpop.f32.mrf.mxu2 }
  0xc2   :  { %v303_v53 = vpop.f32.mrf.mxu3 }
  0xc3   :  { %v316_v54 = vadd.f32 %v303_v53, %v266_v45  ;;  %v175_v55 = vpop.f32.mrf.mxu0 }
  0xc4   :  { %v217_v57 = vadd.f32 %v216_v23, %v175_v55  ;;  %v241_v58 = vpop.f32.mrf.mxu1 }
  0xc5   :  { %v262_v59 = vadd.f32 %v241_v58, %v199_v22  ;;  %v330_v61 = vadd.f32 %v323_v56, %v316_v54 }
  0xc6   :  { %v268_v16 = vadd.f32 %v259_v11, %v217_v57 }
  0xc7   :  { %v312_v62 = vadd.f32 %v291_v28, %v262_v59  ;;  %v338_v2 = vsel %vm333_vm1, %v330_v61, -inf }
  0xc9   :  { %v326_v0 = vadd.f32 %v319_v60, %v312_v62 }
  0xca   :  { %v306_v1 = vpop.f32.mrf.mxu3 }
  0xcb   :  { %v334_v3 = vsel %vm333_vm1, %v326_v0, -inf  ;;  %v317_v4 = vadd.f32 %v306_v1, %v267_v52  ;;  %v377_v5 = vpop.f32.mrf.mxu0  ;;  %v353_v52 = vld [vmem:[%s2284_s5] sm:$0xff]  ;;  %s1886_s5 = smov 16  }
  0xcc   :  { %v339_v6 = vmax.f32 %v334_v3, %v338_v2  ;;  %v244_v8 = vpop.f32.mrf.mxu1  ;;  %v378_v9 = vadd.f32 %v2075_v63, %v377_v5  ;;  %455 = vmatpush.msra.mxu1 %v353_v52  ;;  %524 = vmatpush.msrb.mxu2 %v353_v52 }
  0xcd   :  { %v263_v10 = vadd.f32 %v244_v8, %v202_v26  ;;  %v331_v13 = vadd.f32 %v324_v7, %v317_v4  ;;  %v329_v26 = vadd.f32 %v322_v18, %v315_v47  ;;  %589 = vmatpush.msra.mxu3 %v353_v52 }
  0xce   :  { %1642 = vtanh.f32 %v378_v9  ;;  %v1580_v36 = vmul.f32 -1.442695, %v378_v9  ;;  %654 = vmatpush.msrb.mxu1 %v353_v52  ;;  %719 = vmatpush.msra.mxu2 %v353_v52 }
  0xcf   :  { %v313_v14 = vadd.f32 %v294_v34, %v263_v10  ;;  %v340_v22 = vsel %vm333_vm1, %v331_v13, -inf  ;;  %v337_v33 = vsel %vm333_vm1, %v329_v26, -inf  ;;  %784 = vmatpush.msrb.mxu3 %v353_v52 }
  0xd0   :  { %1644 = vpow2.f32 %v1580_v36 }
  0xd1   :  { %v327_v17 = vadd.f32 %v320_v12, %v313_v14 }
  0xd2   :  { %v309_v19 = vpop.f32.mrf.mxu3 }
  0xd3   :  { %v335_v23 = vsel %vm333_vm1, %v327_v17, -inf  ;;  %v318_v24 = vadd.f32 %v309_v19, %v268_v16  ;;  %v380_v56 = vpop.f32.mrf.mxu0 }
  0xd4   :  { %v1643_v25 = vpop.eup %1642  ;;  %v341_v27 = vmax.f32 %v335_v23, %v340_v22  ;;  %v381_v57 = vadd.f32 %v2075_v63, %v380_v56 }
  0xd5   :  { %v332_v28 = vadd.f32 %v325_v20, %v318_v24  ;;  %422 = vrot.lane.b32.xlu0 %v1643_v25, %s1883_s17 }
  0xd6   :  { %v2083_v29 = vmax.f32 %v339_v6, %v341_v27  ;;  %v1645_v37 = vpop.eup %1644 }
  0xd7   :  { %v342_v31 = vsel %vm333_vm1, %v332_v28, -inf  ;;  %v404_v38 = vadd.f32 1.0, %v1645_v37 }
  0xd8   :  { %v343_v32 = vmax.f32 %v336_v30, %v342_v31 }
  0xd9   :  { %1646 = vrcp.f32 %v404_v38  ;;  %v416_v44 = vand.u32 2147483648, %v404_v38  ;;  %vm410_vm3 = vweird.f32 %v404_v38  ;;  %v414_v45 = vand.u32 2147483647, %v404_v38 }
  0xda   :  { %v2088_v34 = vmax.f32 %v343_v32, %v337_v33 }
  0xdb   :  { %v417_v47 = vor.u32 1.1754944e-38, %v416_v44  ;;  %vm415_vm5 = vcmp.eq.f32.partialorder %v414_v45, 8.507059e+37  ;;  %v383_v21 = vpop.f32.mrf.mxu0 }
  0xdc   :  { %v346_v35 = vmax.f32 %v2083_v29, %v2088_v34  ;;  %v384_v22 = vadd.f32 %v2075_v63, %v383_v21  ;;  %v1640_v29 = vld [vmem:[#allocation8] ss:$0 sm:$0xff] }
  0xdf   :  { %v1647_v39 = vpop.eup %1646 }
  0xe0   :  { %v406_v40 = vmul.f32 %v1647_v39, %v404_v38  ;;  %vm411_vm2 = vweird.f32 %v1647_v39 }
  0xe1   :  { %vm412_vm4 = vmor %vm410_vm3, %vm411_vm2 }
  0xe2   :  { %v407_v41 = vsub.f32 1.0, %v406_v40 }
  0xe4   :  { %v408_v42 = vmul.f32 %v1647_v39, %v407_v41 }
  0xe6   :  { %v409_v43 = vadd.f32 %v1647_v39, %v408_v42 }
  0xe8   :  { %v413_v46 = vsel %vm412_vm4, %v1647_v39, %v409_v43 }
  0xe9   :  { %v418_v49 = vsel %vm415_vm5, %v417_v47, %v413_v46 }
 0x147   :  { %v423_v48 = vpop.permute.xlu0 %422 }
 0x148   :  { %v425_v50 = vmul.f32 %v423_v48, %v418_v49 }
 0x14a   :  { %1648 = vtanh.f32 %v425_v50  ;;  %481 = vrot.lane.b32.xlu2 %v425_v50, %s1880_s24 }
 0x150   :  { %v1649_v51 = vpop.eup %1648 }
 0x151   :  { %428 = vrot.lane.b32.xlu0 %v1649_v51, %s1884_s18  ;;  %v386_v51 = vpop.f32.mrf.mxu0 }
 0x1a4   :  { %v482_v13 = vpop.permute.xlu2 %481 }
 0x1c3   :  { %v429_v53 = vpop.permute.xlu0 %428 }
 0x1c4   :  { %v431_v54 = vmul.f32 %v429_v53, %v418_v49 }
 0x1c6   :  { %433 = vrot.lane.b32.xlu1 %v431_v54, %s1885_s20 }
 0x238   :  { %v434_v55 = vpop.permute.xlu1 %433 }
 0x239   :  { %437 = vst.msk [vmem:[#allocation2] sm:$0xff] %vm436_vm6, %v434_v55  ;;  %1581 = vmatmul.msk.f32.vlgmr.msra.gmra.mxu1 %vm436_vm6, %v434_v55 }
 0x23a   :  { %849 = vmatpush.msra.mxu1 %v353_v52  ;;  %v387_v52 = vadd.f32 %v2075_v63, %v386_v51 }
 0x2b6   :  { %v457_v58 = vpop.f32.mrf.mxu1 }
 0x2b7   :  { %v460_v59 = vadd.f32 %v457_v58, %v381_v57 }
 0x2b9   :  { %1650 = vtanh.f32 %v460_v59  ;;  %v1582_v61 = vmul.f32 -1.442695, %v460_v59 }
 0x2bb   :  { %1652 = vpow2.f32 %v1582_v61 }
 0x2bf   :  { %v1651_v60 = vpop.eup %1650 }
 0x2c0   :  { %487 = vrot.lane.b32.xlu1 %v1651_v60, %s1883_s17 }
 0x2c1   :  { %v1653_v62 = vpop.eup %1652 }
 0x2c2   :  { %v464_v0 = vadd.f32 1.0, %v1653_v62 }
 0x2c4   :  { %1654 = vrcp.f32 %v464_v0  ;;  %v476_v6 = vand.u32 2147483648, %v464_v0  ;;  %vm470_vm8 = vweird.f32 %v464_v0  ;;  %v474_v7 = vand.u32 2147483647, %v464_v0 }
 0x2c6   :  { %v477_v9 = vor.u32 1.1754944e-38, %v476_v6  ;;  %vm475_vm10 = vcmp.eq.f32.partialorder %v474_v7, 8.507059e+37 }
 0x2ca   :  { %v1655_v1 = vpop.eup %1654 }
 0x2cb   :  { %v466_v2 = vmul.f32 %v1655_v1, %v464_v0  ;;  %vm471_vm7 = vweird.f32 %v1655_v1 }
 0x2cc   :  { %vm472_vm9 = vmor %vm470_vm8, %vm471_vm7 }
 0x2cd   :  { %v467_v3 = vsub.f32 1.0, %v466_v2 }
 0x2cf   :  { %v468_v4 = vmul.f32 %v1655_v1, %v467_v3 }
 0x2d1   :  { %v469_v5 = vadd.f32 %v1655_v1, %v468_v4 }
 0x2d3   :  { %v473_v8 = vsel %vm472_vm9, %v1655_v1, %v469_v5 }
 0x2d4   :  { %v478_v11 = vsel %vm475_vm10, %v477_v9, %v473_v8 }
 0x2d5   :  { %v484_v14 = vmul.f32 %v482_v13, %v478_v11 }
 0x332   :  { %v488_v10 = vpop.permute.xlu1 %487 }
 0x333   :  { %v490_v12 = vmul.f32 %v488_v10, %v478_v11 }
 0x335   :  { %492 = vrot.lane.b32.xlu2 %v490_v12, %s1880_s24 }
 0x38f   :  { %v493_v15 = vpop.permute.xlu2 %492 }
 0x390   :  { %v495_v16 = vadd.f32 %v493_v15, %v484_v14  ;;  %v389_v15 = vpop.f32.mrf.mxu0 }
 0x392   :  { %1656 = vtanh.f32 %v495_v16 }
 0x398   :  { %v1657_v17 = vpop.eup %1656  ;;  %v392_v51 = vpop.f32.mrf.mxu0 }
 0x399   :  { %498 = vrot.lane.b32.xlu0 %v1657_v17, %s1886_s5 }
 0x40b   :  { %v499_v18 = vpop.permute.xlu0 %498 }
 0x40c   :  { %v501_v19 = vmul.f32 %v499_v18, %v478_v11 }
 0x40e   :  { %503 = vrot.lane.b32.xlu1 %v501_v19, %s1885_s20 }
 0x480   :  { %v504_v20 = vpop.permute.xlu1 %503 }
 0x481   :  { %506 = vst.msk [vmem:[#allocation2 + $0x8] sm:$0xff] %vm436_vm6, %v504_v20  ;;  %1583 = vmatmul.msk.f32.vlgmr.msrb.gmra.mxu2 %vm436_vm6, %v504_v20 }
 0x504   :  { %v526_v23 = vpop.f32.mrf.mxu2 }
 0x505   :  { %v529_v24 = vadd.f32 %v526_v23, %v384_v22 }
 0x507   :  { %1658 = vtanh.f32 %v529_v24  ;;  %v1584_v27 = vmul.f32 -1.442695, %v529_v24 }
 0x509   :  { %1660 = vpow2.f32 %v1584_v27 }
 0x50d   :  { %v1659_v25 = vpop.eup %1658 }
 0x50e   :  { %552 = vrot.lane.b32.xlu2 %v1659_v25, %s1883_s17 }
 0x50f   :  { %v1661_v26 = vpop.eup %1660 }
 0x510   :  { %v533_v28 = vadd.f32 1.0, %v1661_v26 }
 0x512   :  { %1662 = vrcp.f32 %v533_v28  ;;  %v545_v37 = vand.u32 2147483648, %v533_v28  ;;  %vm539_vm12 = vweird.f32 %v533_v28  ;;  %v543_v38 = vand.u32 2147483647, %v533_v28 }
 0x514   :  { %v546_v40 = vor.u32 1.1754944e-38, %v545_v37  ;;  %vm544_vm14 = vcmp.eq.f32.partialorder %v543_v38, 8.507059e+37 }
 0x518   :  { %v1663_v30 = vpop.eup %1662 }
 0x519   :  { %v535_v31 = vmul.f32 %v1663_v30, %v533_v28  ;;  %vm540_vm11 = vweird.f32 %v1663_v30 }
 0x51a   :  { %vm541_vm13 = vmor %vm539_vm12, %vm540_vm11 }
 0x51b   :  { %v536_v32 = vsub.f32 1.0, %v535_v31 }
 0x51d   :  { %v537_v33 = vmul.f32 %v1663_v30, %v536_v32 }
 0x51f   :  { %v538_v36 = vadd.f32 %v1663_v30, %v537_v33 }
 0x521   :  { %v542_v39 = vsel %vm541_vm13, %v1663_v30, %v538_v36 }
 0x522   :  { %v547_v42 = vsel %vm544_vm14, %v546_v40, %v542_v39 }
 0x523   :  { %v549_v44 = vmul.f32 %v547_v42, %v495_v16  ;;  %v390_v16 = vadd.f32 %v2075_v63, %v389_v15 }
 0x568   :  { %v553_v41 = vpop.permute.xlu2 %552 }
 0x569   :  { %v555_v43 = vmul.f32 %v553_v41, %v547_v42 }
 0x56b   :  { %557 = vrot.lane.b32.xlu0 %v555_v43, %s1880_s24 }
 0x5dd   :  { %v558_v45 = vpop.permute.xlu0 %557 }
 0x5de   :  { %v560_v46 = vadd.f32 %v558_v45, %v549_v44  ;;  %v906_v44 = vld [vmem:[%s2286_s7] sm:$0xff] }
 0x5df   :  { %950 = vmatpush.msrb.mxu2 %v906_v44 }
 0x5e0   :  { %1664 = vtanh.f32 %v560_v46 }
 0x5e6   :  { %v1665_v47 = vpop.eup %1664 }
 0x5e7   :  { %563 = vrot.lane.b32.xlu1 %v1665_v47, %s1886_s5  ;;  %v898_v47 = vld [vmem:[#allocation2 + $0x8] sm:$0xff] }
 0x659   :  { %v564_v48 = vpop.permute.xlu1 %563 }
 0x65a   :  { %v566_v49 = vmul.f32 %v564_v48, %v547_v42 }
 0x65c   :  { %568 = vrot.lane.b32.xlu2 %v566_v49, %s1885_s20 }
 0x6b6   :  { %v569_v50 = vpop.permute.xlu2 %568 }
 0x6b7   :  { %571 = vst.msk [vmem:[#allocation2 + $0x10] sm:$0xff] %vm436_vm6, %v569_v50  ;;  %1585 = vmatmul.msk.f32.vlgmr.msra.gmra.mxu3 %vm436_vm6, %v569_v50 }
 0x6be   :  { %v899_v48 = vld [vmem:[#allocation2 + $0x10] sm:$0xff] }
 0x73a   :  { %v591_v53 = vpop.f32.mrf.mxu3 }
 0x73b   :  { %v594_v54 = vadd.f32 %v591_v53, %v387_v52  ;;  %v393_v52 = vadd.f32 %v2075_v63, %v392_v51 }
 0x73d   :  { %1666 = vtanh.f32 %v594_v54  ;;  %v1586_v56 = vmul.f32 -1.442695, %v594_v54 }
 0x73f   :  { %1668 = vpow2.f32 %v1586_v56 }
 0x743   :  { %v1667_v55 = vpop.eup %1666 }
 0x744   :  { %617 = vrot.lane.b32.xlu0 %v1667_v55, %s1883_s17  ;;  %v2140_v55 = vld [vmem:[#allocation7] ss:$0 sm:$0xff] }
 0x745   :  { %v1669_v57 = vpop.eup %1668 }
 0x746   :  { %v598_v58 = vadd.f32 1.0, %v1669_v57 }
 0x748   :  { %1670 = vrcp.f32 %v598_v58  ;;  %v610_v1 = vand.u32 2147483648, %v598_v58  ;;  %vm604_vm0 = vweird.f32 %v598_v58  ;;  %v608_v2 = vand.u32 2147483647, %v598_v58 }
 0x74a   :  { %v611_v4 = vor.u32 1.1754944e-38, %v610_v1  ;;  %vm609_vm3 = vcmp.eq.f32.partialorder %v608_v2, 8.507059e+37 }
 0x74e   :  { %v1671_v59 = vpop.eup %1670 }
 0x74f   :  { %v600_v60 = vmul.f32 %v1671_v59, %v598_v58  ;;  %vm605_vm15 = vweird.f32 %v1671_v59 }
 0x750   :  { %vm606_vm2 = vmor %vm604_vm0, %vm605_vm15 }
 0x751   :  { %v601_v61 = vsub.f32 1.0, %v600_v60 }
 0x753   :  { %v602_v62 = vmul.f32 %v1671_v59, %v601_v61 }
 0x755   :  { %v603_v0 = vadd.f32 %v1671_v59, %v602_v62 }
 0x757   :  { %v607_v3 = vsel %vm606_vm2, %v1671_v59, %v603_v0 }
 0x758   :  { %v612_v6 = vsel %vm609_vm3, %v611_v4, %v607_v3 }
 0x759   :  { %v614_v8 = vmul.f32 %v612_v6, %v560_v46  ;;  %v897_v46 = vld [vmem:[#allocation2] sm:$0xff] }
 0x7b6   :  { %v618_v5 = vpop.permute.xlu0 %617 }
 0x7b7   :  { %v620_v7 = vmul.f32 %v618_v5, %v612_v6 }
 0x7b9   :  { %622 = vrot.lane.b32.xlu1 %v620_v7, %s1880_s24 }
 0x82b   :  { %v623_v9 = vpop.permute.xlu1 %622 }
 0x82c   :  { %v625_v10 = vadd.f32 %v623_v9, %v614_v8 }
 0x82e   :  { %1672 = vtanh.f32 %v625_v10 }
 0x834   :  { %v1673_v11 = vpop.eup %1672 }
 0x835   :  { %628 = vrot.lane.b32.xlu2 %v1673_v11, %s1886_s5 }
 0x88f   :  { %v629_v12 = vpop.permute.xlu2 %628 }
 0x890   :  { %v631_v13 = vmul.f32 %v629_v12, %v612_v6 }
 0x892   :  { %633 = vrot.lane.b32.xlu0 %v631_v13, %s1885_s20 }
 0x904   :  { %v634_v14 = vpop.permute.xlu0 %633 }
 0x905   :  { %636 = vst.msk [vmem:[#allocation2 + $0x18] sm:$0xff] %vm436_vm6, %v634_v14  ;;  %1587 = vmatmul.msk.f32.vlgmr.msrb.gmra.mxu1 %vm436_vm6, %v634_v14 }
 0x90c   :  { %v900_v49 = vld [vmem:[#allocation2 + $0x18] sm:$0xff] }
 0x982   :  { %v656_v17 = vpop.f32.mrf.mxu1 }
 0x983   :  { %v659_v18 = vadd.f32 %v656_v17, %v390_v16 }
 0x985   :  { %1674 = vtanh.f32 %v659_v18  ;;  %v1588_v20 = vmul.f32 -1.442695, %v659_v18 }
 0x987   :  { %1676 = vpow2.f32 %v1588_v20 }
 0x98b   :  { %v1675_v19 = vpop.eup %1674 }
 0x98c   :  { %682 = vrot.lane.b32.xlu1 %v1675_v19, %s1883_s17 }
 0x98d   :  { %v1677_v21 = vpop.eup %1676 }
 0x98e   :  { %v663_v22 = vadd.f32 1.0, %v1677_v21 }
 0x990   :  { %1678 = vrcp.f32 %v663_v22  ;;  %v675_v28 = vand.u32 2147483648, %v663_v22  ;;  %vm669_vm5 = vweird.f32 %v663_v22  ;;  %v673_v30 = vand.u32 2147483647, %v663_v22 }
 0x992   :  { %v676_v32 = vor.u32 1.1754944e-38, %v675_v28  ;;  %vm674_vm8 = vcmp.eq.f32.partialorder %v673_v30, 8.507059e+37 }
 0x996   :  { %v1679_v23 = vpop.eup %1678 }
 0x997   :  { %v665_v24 = vmul.f32 %v1679_v23, %v663_v22  ;;  %vm670_vm4 = vweird.f32 %v1679_v23 }
 0x998   :  { %vm671_vm7 = vmor %vm669_vm5, %vm670_vm4 }
 0x999   :  { %v666_v25 = vsub.f32 1.0, %v665_v24 }
 0x99b   :  { %v667_v27 = vmul.f32 %v1679_v23, %v666_v25 }
 0x99d   :  { %v668_v26 = vadd.f32 %v1679_v23, %v667_v27 }
 0x99f   :  { %v672_v31 = vsel %vm671_vm7, %v1679_v23, %v668_v26 }
 0x9a0   :  { %v677_v36 = vsel %vm674_vm8, %v676_v32, %v672_v31 }
 0x9a1   :  { %v679_v38 = vmul.f32 %v677_v36, %v625_v10 }
 0x9fe   :  { %v683_v33 = vpop.permute.xlu1 %682 }
 0x9ff   :  { %v685_v37 = vmul.f32 %v683_v33, %v677_v36 }
 0xa01   :  { %687 = vrot.lane.b32.xlu2 %v685_v37, %s1880_s24 }
 0xa5b   :  { %v688_v39 = vpop.permute.xlu2 %687 }
 0xa5c   :  { %v2124_v40 = vadd.f32 %v688_v39, %v679_v38  ;;  %v2157_v39 = vld [vmem:[#allocation5] sm:$0xff] }
 0xa5d   :  { %1027 = vmatpush.msra.mxu3 %v2157_v39  ;;  %1095 = vmatpush.msrb.mxu1 %v2157_v39 }
 0xa5e   :  { %1680 = vtanh.f32 %v2124_v40 }
 0xa64   :  { %v1681_v41 = vpop.eup %1680 }
 0xa65   :  { %693 = vrot.lane.b32.xlu0 %v1681_v41, %s1886_s5 }
 0xad7   :  { %v694_v42 = vpop.permute.xlu0 %693 }
 0xad8   :  { %v696_v43 = vmul.f32 %v694_v42, %v677_v36 }
 0xada   :  { %698 = vrot.lane.b32.xlu1 %v696_v43, %s1885_s20  ;;  %v395_v43 = vpop.f32.mrf.mxu0 }
 0xadb   :  { %v396_v44 = vadd.f32 %v2075_v63, %v395_v43 }
 0xb4c   :  { %v699_v45 = vpop.permute.xlu1 %698 }
 0xb4d   :  { %701 = vst.msk [vmem:[#allocation2 + $0x20] sm:$0xff] %vm436_vm6, %v699_v45  ;;  %1589 = vmatmul.msk.f32.vlgmr.msra.gmra.mxu2 %vm436_vm6, %v699_v45 }
 0xb54   :  { %v901_v50 = vld [vmem:[#allocation2 + $0x20] sm:$0xff] }
 0xb55   :  { %1595 = vmatmul.msk.f32.vlgmr.msrb.gmra.mxu2 %vm436_vm6, %v897_v46 }
 0xb5d   :  { %1596 = vmatmul.msk.f32.gmra.mxu2 %vm436_vm6, %v898_v47 }
 0xb65   :  { %1597 = vmatmul.msk.f32.gmra.mxu2 %vm436_vm6, %v899_v48 }
 0xb6d   :  { %1598 = vmatmul.msk.f32.gmra.mxu2 %vm436_vm6, %v900_v49 }
 0xb75   :  { %1599 = vmatmul.msk.f32.gmra.mxu2 %vm436_vm6, %v901_v50 }
 0xbd0   :  { %v721_v53 = vpop.f32.mrf.mxu2 }
 0xbd1   :  { %v724_v54 = vadd.f32 %v721_v53, %v393_v52 }
 0xbd3   :  { %1682 = vtanh.f32 %v724_v54  ;;  %v1590_v60 = vmul.f32 -1.442695, %v724_v54 }
 0xbd8   :  { %v952_v56 = vpop.f32.mrf.mxu2 }
 0xbd9   :  { %v1683_v57 = vpop.eup %1682  ;;  %v953_v58 = vadd.f32 %v2140_v55, %v952_v56 }
 0xbda   :  { %747 = vrot.lane.b32.xlu2 %v1683_v57, %s1883_s17 }
 0xbdb   :  { %1684 = vtanh.f32 %v953_v58  ;;  %v1603_v3 = vmul.f32 -1.442695, %v953_v58 }
 0xbdc   :  { %1686 = vpow2.f32 %v1590_v60 }
 0xbe0   :  { %v955_v47 = vpop.f32.mrf.mxu2 }
 0xbe1   :  { %v1685_v59 = vpop.eup %1684  ;;  %v956_v48 = vadd.f32 %v2140_v55, %v955_v47 }
 0xbe2   :  { %997 = vrot.lane.b32.xlu1 %v1685_v59, %s1883_s17  ;;  %v1687_v61 = vpop.eup %1686 }
 0xbe3   :  { %v728_v62 = vadd.f32 1.0, %v1687_v61 }
 0xbe5   :  { %1688 = vrcp.f32 %v728_v62  ;;  %v740_v6 = vand.u32 2147483648, %v728_v62  ;;  %vm734_vm10 = vweird.f32 %v728_v62  ;;  %v738_v7 = vand.u32 2147483647, %v728_v62 }
 0xbe6   :  { %1690 = vpow2.f32 %v1603_v3 }
 0xbe7   :  { %v741_v10 = vor.u32 1.1754944e-38, %v740_v6  ;;  %vm739_vm12 = vcmp.eq.f32.partialorder %v738_v7, 8.507059e+37 }
 0xbeb   :  { %v1689_v0 = vpop.eup %1688 }
 0xbec   :  { %v730_v1 = vmul.f32 %v1689_v0, %v728_v62  ;;  %vm735_vm9 = vweird.f32 %v1689_v0  ;;  %v1691_v8 = vpop.eup %1690 }
 0xbed   :  { %vm736_vm11 = vmor %vm734_vm10, %vm735_vm9  ;;  %v979_v11 = vadd.f32 1.0, %v1691_v8 }
 0xbee   :  { %v731_v2 = vsub.f32 1.0, %v730_v1 }
 0xbef   :  { %1692 = vrcp.f32 %v979_v11  ;;  %v991_v20 = vand.u32 2147483648, %v979_v11  ;;  %vm985_vm14 = vweird.f32 %v979_v11  ;;  %v989_v21 = vand.u32 2147483647, %v979_v11 }
 0xbf0   :  { %v732_v4 = vmul.f32 %v1689_v0, %v731_v2 }
 0xbf1   :  { %v992_v23 = vor.u32 1.1754944e-38, %v991_v20  ;;  %vm990_vm0 = vcmp.eq.f32.partialorder %v989_v21, 8.507059e+37 }
 0xbf2   :  { %v733_v5 = vadd.f32 %v1689_v0, %v732_v4 }
 0xbf4   :  { %v737_v9 = vsel %vm736_vm11, %v1689_v0, %v733_v5 }
 0xbf5   :  { %v742_v13 = vsel %vm739_vm12, %v741_v10, %v737_v9  ;;  %v1693_v15 = vpop.eup %1692 }
 0xbf6   :  { %v981_v16 = vmul.f32 %v1693_v15, %v979_v11  ;;  %vm986_vm13 = vweird.f32 %v1693_v15  ;;  %v744_v28 = vmul.f32 %v742_v13, %v2124_v40 }
 0xbf7   :  { %vm987_vm15 = vmor %vm985_vm14, %vm986_vm13 }
 0xbf8   :  { %v982_v17 = vsub.f32 1.0, %v981_v16 }
 0xbfa   :  { %v983_v18 = vmul.f32 %v1693_v15, %v982_v17 }
 0xbfc   :  { %v984_v19 = vadd.f32 %v1693_v15, %v983_v18 }
 0xbfe   :  { %v988_v22 = vsel %vm987_vm15, %v1693_v15, %v984_v19 }
 0xbff   :  { %v993_v25 = vsel %vm990_vm0, %v992_v23, %v988_v22 }
 0xc34   :  { %v748_v12 = vpop.permute.xlu2 %747 }
 0xc35   :  { %v750_v14 = vmul.f32 %v748_v12, %v742_v13 }
 0xc37   :  { %752 = vrot.lane.b32.xlu0 %v750_v14, %s1880_s24 }
 0xc54   :  { %v998_v24 = vpop.permute.xlu1 %997 }
 0xc55   :  { %v1000_v27 = vmul.f32 %v998_v24, %v993_v25 }
 0xc57   :  { %1694 = vtanh.f32 %v1000_v27 }
 0xc5d   :  { %v1695_v26 = vpop.eup %1694 }
 0xc5e   :  { %1003 = vrot.lane.b32.xlu0 %v1695_v26, %s1884_s18 }
 0xca9   :  { %v753_v30 = vpop.permute.xlu0 %752 }
 0xcaa   :  { %v2148_v31 = vadd.f32 %v753_v30, %v744_v28 }
 0xcac   :  { %1696 = vtanh.f32 %v2148_v31 }
 0xcb2   :  { %v1697_v32 = vpop.eup %1696 }
 0xcb3   :  { %758 = vrot.lane.b32.xlu2 %v1697_v32, %s1886_s5 }
 0xcd0   :  { %v1004_v33 = vpop.permute.xlu0 %1003 }
 0xcd1   :  { %v2152_v36 = vmul.f32 %v1004_v33, %v993_v25 }
 0xcd3   :  { %1008 = vrot.lane.b32.xlu2 %v2152_v36, %s1885_s20 }
 0xd0d   :  { %v759_v37 = vpop.permute.xlu2 %758 }
 0xd0e   :  { %v761_v38 = vmul.f32 %v759_v37, %v742_v13 }
 0xd10   :  { %763 = vrot.lane.b32.xlu1 %v761_v38, %s1885_s20 }
 0xd2d   :  { %v1009_v41 = vpop.permute.xlu2 %1008 }
 0xd82   :  { %v764_v40 = vpop.permute.xlu1 %763 }
 0xd83   :  { %766 = vst.msk [vmem:[#allocation2 + $0x28] sm:$0xff] %vm436_vm6, %v764_v40  ;;  %1591 = vmatmul.msk.f32.vlgmr.msrb.gmra.mxu3 %vm436_vm6, %v764_v40 }
 0xd84   :  { %1159 = vmatpush.msrb.mxu3 %v2157_v39 }
 0xd8a   :  { %v902_v42 = vld [vmem:[#allocation2 + $0x28] sm:$0xff] }
 0xd8b   :  { %1600 = vmatmul.msk.f32.gmra.mxu2 %vm436_vm6, %v902_v42  ;;  %1604 = vmatmul.msk.f32.vlgmr.msra.gmra.mxu3 %vm436_vm6, %v1009_v41  ;;  %v958_v42 = vpop.f32.mrf.mxu2 }
 0xd8c   :  { %1287 = vmatpush.msra.mxu3 %v2157_v39  ;;  %v959_v43 = vadd.f32 %v2140_v55, %v958_v42 }
 0xe06   :  { %v786_v45 = vpop.f32.mrf.mxu3 }
 0xe07   :  { %v789_v46 = vadd.f32 %v786_v45, %v396_v44 }
 0xe09   :  { %1698 = vtanh.f32 %v789_v46  ;;  %v1592_v53 = vmul.f32 -1.442695, %v789_v46 }
 0xe0e   :  { %v1029_v49 = vpop.f32.mrf.mxu3 }
 0xe0f   :  { %v1699_v50 = vpop.eup %1698  ;;  %v1032_v51 = vadd.f32 %v1029_v49, %v956_v48 }
 0xe10   :  { %812 = vrot.lane.b32.xlu0 %v1699_v50, %s1883_s17 }
 0xe11   :  { %1700 = vtanh.f32 %v1032_v51  ;;  %v1605_v63 = vmul.f32 -1.442695, %v1032_v51 }
 0xe12   :  { %1702 = vpow2.f32 %v1592_v53 }
 0xe13   :  { %1704 = vpow2.f32 %v1605_v63 }
 0xe17   :  { %v1701_v52 = vpop.eup %1700 }
 0xe18   :  { %1053 = vrot.lane.b32.xlu0 %v1000_v27, %s1880_s24  ;;  %1059 = vrot.lane.b32.xlu1 %v1701_v52, %s1883_s17  ;;  %v1703_v54 = vpop.eup %1702 }
 0xe19   :  { %v793_v56 = vadd.f32 1.0, %v1703_v54  ;;  %v1705_v57 = vpop.eup %1704 }
 0xe1a   :  { %v1036_v58 = vadd.f32 1.0, %v1705_v57 }
 0xe1b   :  { %1706 = vrcp.f32 %v793_v56  ;;  %v805_v4 = vand.u32 2147483648, %v793_v56  ;;  %vm799_vm3 = vweird.f32 %v793_v56  ;;  %v803_v5 = vand.u32 2147483647, %v793_v56 }
 0xe1c   :  { %1708 = vrcp.f32 %v1036_v58  ;;  %v1048_v13 = vand.u32 2147483648, %v1036_v58  ;;  %vm1042_vm8 = vweird.f32 %v1036_v58  ;;  %v1046_v14 = vand.u32 2147483647, %v1036_v58 }
 0xe1d   :  { %v806_v8 = vor.u32 1.1754944e-38, %v805_v4  ;;  %vm804_vm5 = vcmp.eq.f32.partialorder %v803_v5, 8.507059e+37 }
 0xe1e   :  { %v1049_v16 = vor.u32 1.1754944e-38, %v1048_v13  ;;  %vm1047_vm10 = vcmp.eq.f32.partialorder %v1046_v14, 8.507059e+37 }
 0xe21   :  { %v1707_v59 = vpop.eup %1706 }
 0xe22   :  { %v795_v60 = vmul.f32 %v1707_v59, %v793_v56  ;;  %v1709_v62 = vpop.eup %1708  ;;  %vm800_vm2 = vweird.f32 %v1707_v59 }
 0xe23   :  { %v1038_v1 = vmul.f32 %v1709_v62, %v1036_v58  ;;  %vm801_vm4 = vmor %vm799_vm3, %vm800_vm2  ;;  %vm1043_vm7 = vweird.f32 %v1709_v62 }
 0xe24   :  { %v796_v61 = vsub.f32 1.0, %v795_v60  ;;  %vm1044_vm9 = vmor %vm1042_vm8, %vm1043_vm7 }
 0xe25   :  { %v1039_v3 = vsub.f32 1.0, %v1038_v1 }
 0xe26   :  { %v797_v0 = vmul.f32 %v1707_v59, %v796_v61 }
 0xe27   :  { %v1040_v7 = vmul.f32 %v1709_v62, %v1039_v3 }
 0xe28   :  { %v798_v2 = vadd.f32 %v1707_v59, %v797_v0 }
 0xe29   :  { %v1041_v12 = vadd.f32 %v1709_v62, %v1040_v7 }
 0xe2a   :  { %v802_v6 = vsel %vm801_vm4, %v1707_v59, %v798_v2 }
 0xe2b   :  { %v807_v10 = vsel %vm804_vm5, %v806_v8, %v802_v6  ;;  %v1045_v15 = vsel %vm1044_vm9, %v1709_v62, %v1041_v12  ;;  %v961_v8 = vpop.f32.mrf.mxu2 }
 0xe2c   :  { %v1050_v17 = vsel %vm1047_vm10, %v1049_v16, %v1045_v15  ;;  %v809_v20 = vmul.f32 %v807_v10, %v2148_v31 }
 0xe82   :  { %v813_v9 = vpop.permute.xlu0 %812 }
 0xe83   :  { %v815_v11 = vmul.f32 %v813_v9, %v807_v10  ;;  %v962_v9 = vadd.f32 %v2140_v55, %v961_v8 }
 0xe85   :  { %817 = vrot.lane.b32.xlu2 %v815_v11, %s1880_s24 }
 0xe8a   :  { %v1060_v18 = vpop.permute.xlu1 %1059  ;;  %v1054_v24 = vpop.permute.xlu0 %1053 }
 0xe8b   :  { %v1062_v19 = vmul.f32 %v1060_v18, %v1050_v17  ;;  %v1056_v25 = vmul.f32 %v1054_v24, %v1050_v17 }
 0xe8d   :  { %1064 = vrot.lane.b32.xlu1 %v1062_v19, %s1880_s24 }
 0xedf   :  { %v818_v21 = vpop.permute.xlu2 %817 }
 0xee0   :  { %v2175_v22 = vadd.f32 %v818_v21, %v809_v20 }
 0xee2   :  { %1710 = vtanh.f32 %v2175_v22 }
 0xee8   :  { %v1711_v23 = vpop.eup %1710 }
 0xee9   :  { %823 = vrot.lane.b32.xlu2 %v1711_v23, %s1886_s5 }
 0xeff   :  { %v1065_v27 = vpop.permute.xlu1 %1064 }
 0xf00   :  { %v1067_v26 = vadd.f32 %v1065_v27, %v1056_v25 }
 0xf02   :  { %1712 = vtanh.f32 %v1067_v26 }
 0xf08   :  { %v1713_v28 = vpop.eup %1712 }
 0xf09   :  { %1070 = vrot.lane.b32.xlu0 %v1713_v28, %s1886_s5 }
 0xf43   :  { %v824_v30 = vpop.permute.xlu2 %823 }
 0xf44   :  { %v826_v32 = vmul.f32 %v824_v30, %v807_v10 }
 0xf46   :  { %828 = vrot.lane.b32.xlu1 %v826_v32, %s1885_s20 }
 0xf7b   :  { %v1071_v31 = vpop.permute.xlu0 %1070 }
 0xf7c   :  { %v1073_v33 = vmul.f32 %v1071_v31, %v1050_v17 }
 0xf7e   :  { %1076 = vrot.lane.b32.xlu2 %v1073_v33, %s1885_s20  ;;  %v1074_v4 = vmax.f32 %v2152_v36, %v1073_v33 }
 0xfb8   :  { %v829_v37 = vpop.permute.xlu1 %828 }
 0xfb9   :  { %831 = vst.msk [vmem:[#allocation2 + $0x30] sm:$0xff] %vm436_vm6, %v829_v37  ;;  %1593 = vmatmul.msk.f32.vlgmr.msra.gmra.mxu1 %vm436_vm6, %v829_v37 }
 0xfba   :  { %1223 = vmatpush.msra.mxu1 %v2157_v39 }
 0xfc0   :  { %v903_v38 = vld [vmem:[#allocation2 + $0x30] sm:$0xff] }
 0xfc1   :  { %1601 = vmatmul.msk.f32.gmra.mxu2 %vm436_vm6, %v903_v38 }
 0xfd8   :  { %v1077_v40 = vpop.permute.xlu2 %1076 }
 0xfd9   :  { %1606 = vmatmul.msk.f32.vlgmr.msrb.gmra.mxu1 %vm436_vm6, %v1077_v40  ;;  %v964_v40 = vpop.f32.mrf.mxu2 }
 0xfda   :  { %1351 = vmatpush.msrb.mxu1 %v2157_v39  ;;  %v965_v42 = vadd.f32 %v2140_v55, %v964_v40 }
0x1036   :  { %v2188_v41 = vpop.f32.mrf.mxu1 }
0x1056   :  { %v1097_v44 = vpop.f32.mrf.mxu1 }
0x1057   :  { %v1100_v45 = vadd.f32 %v1097_v44, %v959_v43 }
0x1059   :  { %1714 = vtanh.f32 %v1100_v45  ;;  %v1607_v47 = vmul.f32 -1.442695, %v1100_v45 }
0x105b   :  { %1716 = vpow2.f32 %v1607_v47 }
0x105f   :  { %v1715_v46 = vpop.eup %1714 }
0x1060   :  { %1123 = vrot.lane.b32.xlu0 %v1715_v46, %s1883_s17 }
0x1061   :  { %v1717_v48 = vpop.eup %1716 }
0x1062   :  { %v1104_v49 = vadd.f32 1.0, %v1717_v48 }
0x1064   :  { %1718 = vrcp.f32 %v1104_v49  ;;  %v1116_v54 = vand.u32 2147483648, %v1104_v49  ;;  %vm1110_vm12 = vweird.f32 %v1104_v49  ;;  %v1114_v56 = vand.u32 2147483647, %v1104_v49 }
0x1066   :  { %v1117_v58 = vor.u32 1.1754944e-38, %v1116_v54  ;;  %vm1115_vm14 = vcmp.eq.f32.partialorder %v1114_v56, 8.507059e+37 }
0x106a   :  { %v1719_v50 = vpop.eup %1718 }
0x106b   :  { %v1106_v51 = vmul.f32 %v1719_v50, %v1104_v49  ;;  %vm1111_vm11 = vweird.f32 %v1719_v50 }
0x106c   :  { %vm1112_vm13 = vmor %vm1110_vm12, %vm1111_vm11 }
0x106d   :  { %v1107_v52 = vsub.f32 1.0, %v1106_v51 }
0x106f   :  { %v1108_v53 = vmul.f32 %v1719_v50, %v1107_v52 }
0x1071   :  { %v1109_v63 = vadd.f32 %v1719_v50, %v1108_v53 }
0x1073   :  { %v1113_v57 = vsel %vm1112_vm13, %v1719_v50, %v1109_v63 }
0x1074   :  { %v1118_v60 = vsel %vm1115_vm14, %v1117_v58, %v1113_v57 }
0x1075   :  { %v1120_v62 = vmul.f32 %v1118_v60, %v1067_v26 }
0x10d2   :  { %v1124_v59 = vpop.permute.xlu0 %1123 }
0x10d3   :  { %v1126_v61 = vmul.f32 %v1124_v59, %v1118_v60 }
0x10d5   :  { %1128 = vrot.lane.b32.xlu1 %v1126_v61, %s1880_s24 }
0x1147   :  { %v1129_v0 = vpop.permute.xlu1 %1128 }
0x1148   :  { %v1131_v1 = vadd.f32 %v1129_v0, %v1120_v62 }
0x114a   :  { %1720 = vtanh.f32 %v1131_v1 }
0x1150   :  { %v1721_v2 = vpop.eup %1720 }
0x1151   :  { %1134 = vrot.lane.b32.xlu2 %v1721_v2, %s1886_s5 }
0x11ab   :  { %v1135_v3 = vpop.permute.xlu2 %1134 }
0x11ac   :  { %v1137_v5 = vmul.f32 %v1135_v3, %v1118_v60 }
0x11ae   :  { %v2195_v6 = vmax.f32 %v1074_v4, %v1137_v5  ;;  %1140 = vrot.lane.b32.xlu0 %v1137_v5, %s1885_s20 }
0x1220   :  { %v1141_v7 = vpop.permute.xlu0 %1140 }
0x1221   :  { %1608 = vmatmul.msk.f32.vlgmr.msrb.gmra.mxu3 %vm436_vm6, %v1141_v7 }
0x1222   :  { %1415 = vmatpush.msrb.mxu3 %v2157_v39 }
0x12a4   :  { %v1161_v10 = vpop.f32.mrf.mxu3 }
0x12a5   :  { %v1164_v11 = vadd.f32 %v1161_v10, %v962_v9 }
0x12a7   :  { %1722 = vtanh.f32 %v1164_v11  ;;  %v1609_v36 = vmul.f32 -1.442695, %v1164_v11 }
0x12a9   :  { %1724 = vpow2.f32 %v1609_v36 }
0x12ad   :  { %v1723_v12 = vpop.eup %1722 }
0x12ae   :  { %1187 = vrot.lane.b32.xlu1 %v1723_v12, %s1883_s17 }
0x12af   :  { %v1725_v13 = vpop.eup %1724 }
0x12b0   :  { %v1168_v14 = vadd.f32 1.0, %v1725_v13 }
0x12b2   :  { %1726 = vrcp.f32 %v1168_v14  ;;  %v1180_v39 = vand.u32 2147483648, %v1168_v14  ;;  %vm1174_vm0 = vweird.f32 %v1168_v14  ;;  %v1178_v20 = vand.u32 2147483647, %v1168_v14 }
0x12b4   :  { %v1181_v23 = vor.u32 1.1754944e-38, %v1180_v39  ;;  %vm1179_vm3 = vcmp.eq.f32.partialorder %v1178_v20, 8.507059e+37  ;;  %v1774_v20 = vld [vmem:[%s2285_s6] ss:$0 sm:$0xff]  ;;  %s1887_s6 = smov 116  }
0x12b8   :  { %v1727_v15 = vpop.eup %1726 }
0x12b9   :  { %v1170_v16 = vmul.f32 %v1727_v15, %v1168_v14  ;;  %vm1175_vm15 = vweird.f32 %v1727_v15 }
0x12ba   :  { %vm1176_vm2 = vmor %vm1174_vm0, %vm1175_vm15 }
0x12bb   :  { %v1171_v17 = vsub.f32 1.0, %v1170_v16 }
0x12bd   :  { %v1172_v18 = vmul.f32 %v1727_v15, %v1171_v17  ;;  %v398_v17 = vpop.f32.mrf.mxu0 }
0x12bf   :  { %v1173_v19 = vadd.f32 %v1727_v15, %v1172_v18 }
0x12c1   :  { %v1177_v21 = vsel %vm1176_vm2, %v1727_v15, %v1173_v19 }
0x12c2   :  { %v1182_v25 = vsel %vm1179_vm3, %v1181_v23, %v1177_v21  ;;  %v399_v21 = vadd.f32 %v1774_v20, %v398_v17 }
0x12c3   :  { %v1184_v26 = vmul.f32 %v1182_v25, %v1131_v1 }
0x1320   :  { %v1188_v24 = vpop.permute.xlu1 %1187 }
0x1321   :  { %v1190_v27 = vmul.f32 %v1188_v24, %v1182_v25 }
0x1323   :  { %1192 = vrot.lane.b32.xlu2 %v1190_v27, %s1880_s24 }
0x137d   :  { %v1193_v28 = vpop.permute.xlu2 %1192 }
0x137e   :  { %v1195_v30 = vadd.f32 %v1193_v28, %v1184_v26 }
0x1380   :  { %1728 = vtanh.f32 %v1195_v30 }
0x1386   :  { %v1729_v32 = vpop.eup %1728 }
0x1387   :  { %1198 = vrot.lane.b32.xlu0 %v1729_v32, %s1886_s5 }
0x13f9   :  { %v1199_v31 = vpop.permute.xlu0 %1198 }
0x13fa   :  { %v1201_v33 = vmul.f32 %v1199_v31, %v1182_v25  ;;  %v854_v25 = vadd.f32 %v2188_v41, %v399_v21 }
0x13fc   :  { %v1202_v37 = vmax.f32 %v2195_v6, %v1201_v33  ;;  %1204 = vrot.lane.b32.xlu1 %v1201_v33, %s1885_s20  ;;  %v967_v6 = vpop.f32.mrf.mxu2 }
0x13fd   :  { %v968_v7 = vadd.f32 %v2140_v55, %v967_v6 }
0x146e   :  { %v1205_v38 = vpop.permute.xlu1 %1204 }
0x146f   :  { %1610 = vmatmul.msk.f32.vlgmr.msra.gmra.mxu1 %vm436_vm6, %v1205_v38  ;;  %v1594_v38 = vmul.f32 -1.442695, %v854_v25 }
0x14ec   :  { %v1225_v43 = vpop.f32.mrf.mxu1 }
0x14ed   :  { %v1228_v44 = vadd.f32 %v1225_v43, %v965_v42 }
0x14ef   :  { %1730 = vtanh.f32 %v1228_v44  ;;  %v1611_v46 = vmul.f32 -1.442695, %v1228_v44 }
0x14f1   :  { %1732 = vpow2.f32 %v1611_v46 }
0x14f5   :  { %v1731_v45 = vpop.eup %1730 }
0x14f6   :  { %1251 = vrot.lane.b32.xlu2 %v1731_v45, %s1883_s17 }
0x14f7   :  { %v1733_v47 = vpop.eup %1732 }
0x14f8   :  { %v1232_v48 = vadd.f32 1.0, %v1733_v47 }
0x14fa   :  { %1734 = vrcp.f32 %v1232_v48  ;;  %v1244_v63 = vand.u32 2147483648, %v1232_v48  ;;  %vm1238_vm5 = vweird.f32 %v1232_v48  ;;  %v1242_v54 = vand.u32 2147483647, %v1232_v48 }
0x14fc   :  { %v1245_v57 = vor.u32 1.1754944e-38, %v1244_v63  ;;  %vm1243_vm8 = vcmp.eq.f32.partialorder %v1242_v54, 8.507059e+37 }
0x1500   :  { %v1735_v49 = vpop.eup %1734 }
0x1501   :  { %v1234_v50 = vmul.f32 %v1735_v49, %v1232_v48  ;;  %vm1239_vm4 = vweird.f32 %v1735_v49 }
0x1502   :  { %vm1240_vm7 = vmor %vm1238_vm5, %vm1239_vm4 }
0x1503   :  { %v1235_v51 = vsub.f32 1.0, %v1234_v50 }
0x1505   :  { %v1236_v52 = vmul.f32 %v1735_v49, %v1235_v51 }
0x1507   :  { %v1237_v53 = vadd.f32 %v1735_v49, %v1236_v52 }
0x1509   :  { %v1241_v56 = vsel %vm1240_vm7, %v1735_v49, %v1237_v53 }
0x150a   :  { %v1246_v59 = vsel %vm1243_vm8, %v1245_v57, %v1241_v56 }
0x150b   :  { %v1248_v61 = vmul.f32 %v1246_v59, %v1195_v30 }
0x1550   :  { %v1252_v58 = vpop.permute.xlu2 %1251 }
0x1551   :  { %v1254_v60 = vmul.f32 %v1252_v58, %v1246_v59  ;;  %v970_v58 = vpop.f32.mrf.mxu2 }
0x1553   :  { %1256 = vrot.lane.b32.xlu0 %v1254_v60, %s1880_s24 }
0x15c5   :  { %v1257_v62 = vpop.permute.xlu0 %1256 }
0x15c6   :  { %v1259_v0 = vadd.f32 %v1257_v62, %v1248_v61 }
0x15c8   :  { %1736 = vtanh.f32 %v1259_v0 }
0x15ce   :  { %v1737_v1 = vpop.eup %1736 }
0x15cf   :  { %1262 = vrot.lane.b32.xlu1 %v1737_v1, %s1886_s5 }
0x1641   :  { %v1263_v2 = vpop.permute.xlu1 %1262 }
0x1642   :  { %v1265_v3 = vmul.f32 %v1263_v2, %v1246_v59  ;;  %v971_v59 = vadd.f32 %v2140_v55, %v970_v58 }
0x1644   :  { %v2211_v4 = vmax.f32 %v1202_v37, %v1265_v3  ;;  %1268 = vrot.lane.b32.xlu2 %v1265_v3, %s1885_s20 }
0x169e   :  { %v1269_v5 = vpop.permute.xlu2 %1268 }
0x169f   :  { %1612 = vmatmul.msk.f32.vlgmr.msra.gmra.mxu3 %vm436_vm6, %v1269_v5 }
0x1722   :  { %v1289_v8 = vpop.f32.mrf.mxu3 }
0x1723   :  { %v1292_v9 = vadd.f32 %v1289_v8, %v968_v7 }
0x1725   :  { %1738 = vtanh.f32 %v1292_v9  ;;  %v1613_v11 = vmul.f32 -1.442695, %v1292_v9 }
0x1727   :  { %1740 = vpow2.f32 %v1613_v11 }
0x172b   :  { %v1739_v10 = vpop.eup %1738 }
0x172c   :  { %1315 = vrot.lane.b32.xlu0 %v1739_v10, %s1883_s17 }
0x172d   :  { %v1741_v12 = vpop.eup %1740 }
0x172e   :  { %v1296_v36 = vadd.f32 1.0, %v1741_v12 }
0x1730   :  { %1742 = vrcp.f32 %v1296_v36  ;;  %v1308_v19 = vand.u32 2147483648, %v1296_v36  ;;  %vm1302_vm10 = vweird.f32 %v1296_v36  ;;  %v1306_v39 = vand.u32 2147483647, %v1296_v36 }
0x1731   :  { %1744 = vtanh.f32 %v854_v25 }
0x1732   :  { %v1309_v24 = vor.u32 1.1754944e-38, %v1308_v19  ;;  %vm1307_vm12 = vcmp.eq.f32.partialorder %v1306_v39, 8.507059e+37 }
0x1736   :  { %v1743_v13 = vpop.eup %1742 }
0x1737   :  { %v1298_v14 = vmul.f32 %v1743_v13, %v1296_v36  ;;  %vm1303_vm9 = vweird.f32 %v1743_v13  ;;  %v1745_v30 = vpop.eup %1744 }
0x1738   :  { %vm1304_vm11 = vmor %vm1302_vm10, %vm1303_vm9  ;;  %vm1476_vm10 = vcmask 1043456  }
0x1739   :  { %v1299_v15 = vsub.f32 1.0, %v1298_v14 }
0x173b   :  { %v1300_v16 = vmul.f32 %v1743_v13, %v1299_v15 }
0x173d   :  { %v1301_v18 = vadd.f32 %v1743_v13, %v1300_v16 }
0x173f   :  { %v1305_v23 = vsel %vm1304_vm11, %v1743_v13, %v1301_v18  ;;  %vm1472_vm11 = vcmask 162816  }
0x1740   :  { %v1310_v26 = vsel %vm1307_vm12, %v1309_v24, %v1305_v23  ;;  %vm1511_vm12 = vcmask 1041408  }
0x1741   :  { %v1312_v32 = vmul.f32 %v1310_v26, %v1259_v0 }
0x179e   :  { %v1316_v27 = vpop.permute.xlu0 %1315 }
0x179f   :  { %v1318_v28 = vmul.f32 %v1316_v27, %v1310_v26 }
0x17a1   :  { %1320 = vrot.lane.b32.xlu1 %v1318_v28, %s1880_s24 }
0x17a9   :  { %877 = vrot.lane.b32.xlu1 %v1745_v30, %s1883_s17 }
0x1813   :  { %v1321_v31 = vpop.permute.xlu1 %1320 }
0x1814   :  { %v2223_v33 = vadd.f32 %v1321_v31, %v1312_v32 }
0x1816   :  { %1746 = vtanh.f32 %v2223_v33 }
0x1817   :  { %1748 = vpow2.f32 %v1594_v38 }
0x181b   :  { %v878_v63 = vpop.permute.xlu1 %877 }
0x181c   :  { %v1747_v37 = vpop.eup %1746 }
0x181d   :  { %1326 = vrot.lane.b32.xlu2 %v1747_v37, %s1886_s5  ;;  %v1749_v41 = vpop.eup %1748 }
0x181e   :  { %v858_v40 = vadd.f32 1.0, %v1749_v41 }
0x1820   :  { %1750 = vrcp.f32 %v858_v40  ;;  %v870_v49 = vand.u32 2147483648, %v858_v40  ;;  %vm864_vm14 = vweird.f32 %v858_v40  ;;  %v868_v50 = vand.u32 2147483647, %v858_v40 }
0x1822   :  { %v871_v53 = vor.u32 1.1754944e-38, %v870_v49  ;;  %vm869_vm0 = vcmp.eq.f32.partialorder %v868_v50, 8.507059e+37 }
0x1826   :  { %v1751_v42 = vpop.eup %1750 }
0x1827   :  { %v860_v43 = vmul.f32 %v1751_v42, %v858_v40  ;;  %vm865_vm13 = vweird.f32 %v1751_v42 }
0x1828   :  { %vm866_vm15 = vmor %vm864_vm14, %vm865_vm13  ;;  %vm1535_vm13 = vcmask 23552  }
0x1829   :  { %v861_v44 = vsub.f32 1.0, %v860_v43 }
0x182b   :  { %v862_v45 = vmul.f32 %v1751_v42, %v861_v44 }
0x182d   :  { %v863_v47 = vadd.f32 %v1751_v42, %v862_v45 }
0x182f   :  { %v867_v52 = vsel %vm866_vm15, %v1751_v42, %v863_v47 }
0x1830   :  { %v872_v54 = vsel %vm869_vm0, %v871_v53, %v867_v52 }
0x1831   :  { %v880_v56 = vmul.f32 %v878_v63, %v872_v54  ;;  %v874_v0 = vmul.f32 %v872_v54, %v2175_v22 }
0x1877   :  { %v1327_v46 = vpop.permute.xlu2 %1326 }
0x1878   :  { %v2227_v48 = vmul.f32 %v1327_v46, %v1310_v26 }
0x187a   :  { %v1330_v51 = vmax.f32 %v2211_v4, %v2227_v48  ;;  %1332 = vrot.lane.b32.xlu0 %v2227_v48, %s1885_s20 }
0x1882   :  { %882 = vrot.lane.b32.xlu0 %v880_v56, %s1880_s24 }
0x18ec   :  { %v1333_v57 = vpop.permute.xlu0 %1332 }
0x18ed   :  { %1614 = vmatmul.msk.f32.vlgmr.msrb.gmra.mxu1 %vm436_vm6, %v1333_v57 }
0x18f4   :  { %v883_v62 = vpop.permute.xlu0 %882 }
0x18f5   :  { %v885_v1 = vadd.f32 %v883_v62, %v874_v0  ;;  %v1465_v62 = vld [vmem:[%s2289_s10] sm:$0xff] }
0x18f6   :  { %v1639_v0 = vld [vmem:[%s2281_s2] ss:$0 sm:$0xff] }
0x196a   :  { %v1353_v60 = vpop.f32.mrf.mxu1 }
0x196b   :  { %v1356_v61 = vadd.f32 %v1353_v60, %v971_v59  ;;  %v1467_v60 = vld [vmem:[%s2289_s10 + $0x10] sm:$0xf] }
0x196c   :  { %1618 = vmatpush.msk.msra.mxu1 %vm1476_vm10, %v1467_v60 }
0x196d   :  { %1752 = vtanh.f32 %v1356_v61  ;;  %v1615_v4 = vmul.f32 -1.442695, %v1356_v61  ;;  %v1466_v61 = vld [vmem:[%s2289_s10 + $0x8] sm:$0xff] }
0x196e   :  { %1754 = vtanh.f32 %v885_v1  ;;  %1494 = vmatpush.msra.mxu1 %v1466_v61  ;;  %v351_v1 = vadd.f32 %v1639_v0, %v346_v35 }
0x196f   :  { %1756 = vpow2.f32 %v1615_v4 }
0x1970   :  { %1495 = vmatpush.msra.mxu1 %v1465_v62 }
0x1973   :  { %v1753_v2 = vpop.eup %1752 }
0x1974   :  { %1379 = vrot.lane.b32.xlu2 %v1753_v2, %s1883_s17  ;;  %v1755_v3 = vpop.eup %1754  ;;  %v352_v2 = vmax.f32 %v351_v1, 0.0 }
0x1975   :  { %v1757_v5 = vpop.eup %1756 }
0x1976   :  { %v1360_v6 = vadd.f32 1.0, %v1757_v5 }
0x1978   :  { %1758 = vrcp.f32 %v1360_v6  ;;  %v1372_v22 = vand.u32 2147483648, %v1360_v6  ;;  %vm1366_vm3 = vweird.f32 %v1360_v6  ;;  %v1370_v12 = vand.u32 2147483647, %v1360_v6 }
0x197a   :  { %v1373_v13 = vor.u32 1.1754944e-38, %v1372_v22  ;;  %vm1371_vm5 = vcmp.eq.f32.partialorder %v1370_v12, 8.507059e+37 }
0x197c   :  { %888 = vrot.lane.b32.xlu2 %v1755_v3, %s1886_s5 }
0x197e   :  { %v1759_v7 = vpop.eup %1758 }
0x197f   :  { %v1362_v8 = vmul.f32 %v1759_v7, %v1360_v6  ;;  %vm1367_vm2 = vweird.f32 %v1759_v7  ;;  %v1502_v6 = vld [vmem:[%s2291_s12 + $0x8] sm:$0x3] }
0x1980   :  { %vm1368_vm4 = vmor %vm1366_vm3, %vm1367_vm2  ;;  %1620 = vmatpush.msk.msra.mxu3 %vm1511_vm12, %v1502_v6 }
0x1981   :  { %v1363_v9 = vsub.f32 1.0, %v1362_v8 }
0x1983   :  { %v1364_v10 = vmul.f32 %v1759_v7, %v1363_v9  ;;  %v1641_v9 = vld [vmem:[%s2292_s13] ss:$0 sm:$0xff] }
0x1985   :  { %v1365_v11 = vadd.f32 %v1759_v7, %v1364_v10 }
0x1987   :  { %v1369_v36 = vsel %vm1368_vm4, %v1759_v7, %v1365_v11  ;;  %v1501_v7 = vld [vmem:[%s2291_s12] sm:$0xff] }
0x1988   :  { %v1374_v15 = vsel %vm1371_vm5, %v1373_v13, %v1369_v36  ;;  %1530 = vmatpush.msra.mxu3 %v1501_v7 }
0x1989   :  { %v1376_v19 = vmul.f32 %v1374_v15, %v2223_v33 }
0x19ce   :  { %v1380_v14 = vpop.permute.xlu2 %1379 }
0x19cf   :  { %v1382_v16 = vmul.f32 %v1380_v14, %v1374_v15 }
0x19d1   :  { %1384 = vrot.lane.b32.xlu1 %v1382_v16, %s1880_s24 }
0x19d6   :  { %v889_v17 = vpop.permute.xlu2 %888 }
0x19d7   :  { %v891_v18 = vmul.f32 %v889_v17, %v872_v54 }
0x19d9   :  { %893 = vrot.lane.b32.xlu1 %v891_v18, %s1885_s20 }
0x1a43   :  { %v1385_v39 = vpop.permute.xlu1 %1384 }
0x1a44   :  { %v1387_v20 = vadd.f32 %v1385_v39, %v1376_v19 }
0x1a46   :  { %1760 = vtanh.f32 %v1387_v20 }
0x1a4b   :  { %v894_v21 = vpop.permute.xlu1 %893 }
0x1a4c   :  { %v1761_v23 = vpop.eup %1760  ;;  %896 = vst.msk [vmem:[#allocation2 + $0x38] sm:$0xff] %vm436_vm6, %v894_v21 }
0x1a4d   :  { %1390 = vrot.lane.b32.xlu0 %v1761_v23, %s1886_s5 }
0x1a53   :  { %v904_v24 = vld [vmem:[#allocation2 + $0x38] sm:$0xff] }
0x1a54   :  { %1602 = vmatmul.msk.f32.gmra.mxu2 %vm436_vm6, %v904_v24 }
0x1abf   :  { %v1391_v25 = vpop.permute.xlu0 %1390 }
0x1ac0   :  { %v1393_v27 = vmul.f32 %v1391_v25, %v1374_v15 }
0x1ac2   :  { %v1394_v26 = vmax.f32 %v1330_v51, %v1393_v27  ;;  %1396 = vrot.lane.b32.xlu2 %v1393_v27, %s1885_s20 }
0x1ad7   :  { %v973_v30 = vpop.f32.mrf.mxu2 }
0x1ad8   :  { %v974_v32 = vadd.f32 %v2140_v55, %v973_v30 }
0x1b1c   :  { %v1397_v28 = vpop.permute.xlu2 %1396 }
0x1b1d   :  { %1616 = vmatmul.msk.f32.vlgmr.msrb.gmra.mxu3 %vm436_vm6, %v1397_v28 }
0x1ba0   :  { %v1417_v31 = vpop.f32.mrf.mxu3 }
0x1ba1   :  { %v1420_v33 = vadd.f32 %v1417_v31, %v974_v32 }
0x1ba3   :  { %1762 = vtanh.f32 %v1420_v33  ;;  %v1617_v38 = vmul.f32 -1.442695, %v1420_v33 }
0x1ba5   :  { %1764 = vpow2.f32 %v1617_v38 }
0x1ba9   :  { %v1763_v37 = vpop.eup %1762 }
0x1baa   :  { %1443 = vrot.lane.b32.xlu0 %v1763_v37, %s1883_s17 }
0x1bab   :  { %v1765_v41 = vpop.eup %1764 }
0x1bac   :  { %v1424_v40 = vadd.f32 1.0, %v1765_v41 }
0x1bae   :  { %1766 = vrcp.f32 %v1424_v40  ;;  %v1436_v47 = vand.u32 2147483648, %v1424_v40  ;;  %vm1430_vm7 = vweird.f32 %v1424_v40  ;;  %v1434_v55 = vand.u32 2147483647, %v1424_v40 }
0x1bb0   :  { %v1437_v49 = vor.u32 1.1754944e-38, %v1436_v47  ;;  %vm1435_vm9 = vcmp.eq.f32.partialorder %v1434_v55, 8.507059e+37 }
0x1bb4   :  { %v1767_v42 = vpop.eup %1766 }
0x1bb5   :  { %v1426_v43 = vmul.f32 %v1767_v42, %v1424_v40  ;;  %vm1431_vm6 = vweird.f32 %v1767_v42 }
0x1bb6   :  { %vm1432_vm8 = vmor %vm1430_vm7, %vm1431_vm6 }
0x1bb7   :  { %v1427_v44 = vsub.f32 1.0, %v1426_v43 }
0x1bb9   :  { %v1428_v45 = vmul.f32 %v1767_v42, %v1427_v44 }
0x1bbb   :  { %v1429_v46 = vadd.f32 %v1767_v42, %v1428_v45 }
0x1bbd   :  { %v1433_v48 = vsel %vm1432_vm8, %v1767_v42, %v1429_v46 }
0x1bbe   :  { %v1438_v51 = vsel %vm1435_vm9, %v1437_v49, %v1433_v48 }
0x1bbf   :  { %v1440_v53 = vmul.f32 %v1438_v51, %v1387_v20 }
0x1c1c   :  { %v1444_v50 = vpop.permute.xlu0 %1443 }
0x1c1d   :  { %v1446_v52 = vmul.f32 %v1444_v50, %v1438_v51 }
0x1c1f   :  { %1448 = vrot.lane.b32.xlu1 %v1446_v52, %s1880_s24 }
0x1c91   :  { %v1449_v63 = vpop.permute.xlu1 %1448 }
0x1c92   :  { %v1451_v54 = vadd.f32 %v1449_v63, %v1440_v53 }
0x1c94   :  { %1768 = vtanh.f32 %v1451_v54 }
0x1c9a   :  { %v1769_v56 = vpop.eup %1768 }
0x1c9b   :  { %1454 = vrot.lane.b32.xlu2 %v1769_v56, %s1886_s5 }
0x1cf5   :  { %v1455_v57 = vpop.permute.xlu2 %1454 }
0x1cf6   :  { %v1457_v58 = vmul.f32 %v1455_v57, %v1438_v51 }
0x1cf8   :  { %v1458_v59 = vmax.f32 %v1394_v26, %v1457_v58 }
0x1cfa   :  { %1460 = vrot.lane.b32.xlu0 %v1458_v59, %s1887_s6 }
0x1d6c   :  { %v1461_v3 = vpop.permute.xlu0 %1460 }
0x1d6d   :  { %v1463_v4 = vsel %vm333_vm1, %v352_v2, %v1461_v3  ;;  %vm1507_vm1 = vcmask 80896  }
0x1d6e   :  { %1770 = vtanh.f32 %v1463_v4 }
0x1d74   :  { %v1771_v5 = vpop.eup %1770 }
0x1d75   :  { %1619 = vmatmul.msk.f32.vlgmr.msra.gmra.mxu1 %vm1472_vm11, %v1771_v5 }
0x1df2   :  { %v1497_v34 = vpop.f32.mrf.mxu1 }
0x1df3   :  { %v1498_v35 = vadd.f32 %v1640_v29, %v1497_v34 }
0x1df5   :  { %1772 = vtanh.f32 %v1498_v35 }
0x1dfb   :  { %v1773_v8 = vpop.eup %1772 }
0x1dfc   :  { %1621 = vmatmul.msk.f32.vlgmr.msra.gmra.mxu3 %vm1507_vm1, %v1773_v8 }
0x1e7f   :  { %v1532_v10 = vpop.f32.mrf.mxu3 }
0x1e80   :  { %v1533_v11 = vadd.f32 %v1641_v9, %v1532_v10 }
0x1e82   :  { %1536 = vst.msk [vmem:[%s2293_s14] sm:$0xff] %vm1535_vm13, %v1533_v11 }
0x1e83   :  { %1541 = vsyncpa [#allocation4], 1 }
0x1e84   :  { %1542 = vsyncpa [#allocation6], 1 }
0x1e85   :  { %1543 = vsyncpa [#allocation9], 1 }

</bundles_post_ra>
